<compile_context>
chip_gen: v6e
topology: v6e:2x2x1
jax: 0.10.0
libtpu: 0.0.40
codegen_flags: <defaults>
</compile_context>

<pallas_src>
import functools

import jax
import jax.numpy as jnp
from jax.experimental import pallas as pl
from jax.experimental.pallas import tpu as pltpu


# ----------------------------------------------------------------------------
# Fused multi-layer GCN kernel
#   grid = (num_layers, num_row_tiles)        (both axes sequential)
#   step (l, r):
#     if r == 0:  H = act_{l-1} @ W_l         (act_{-1} := X)   -> VMEM scratch
#     y = A_hat[rows_r, :] @ H + b_l
#     if l <  L-1:  act[rows_r] = relu(y)     (bf16, consumed by layer l+1)
#     if l == L-1:  out[rows_r] = y           (f32, lane-dense store)
# ----------------------------------------------------------------------------
def _fused_gcn_kernel(a_ref, x_ref, w_ref, b_ref, o_ref, h_ref, act_ref,
                      *, num_layers: int, tm: int):
    l = pl.program_id(0)          # layer index
    r = pl.program_id(1)          # row-tile index

    # H = activation @ W, computed once per layer at its first row tile and
    # kept resident in VMEM for every row tile of that layer.
    # TODO(synk): hide this per-layer bubble by computing H_{l+1} at (l, R-1)
    # (lookahead W index_map) in the streaming regime.
    @pl.when(r == 0)
    def _compute_h():
        w = w_ref[0]              # (Cpad, Cpad) bf16

        @pl.when(l == 0)
        def _():
            h_ref[...] = jnp.dot(
                x_ref[...], w, preferred_element_type=jnp.float32
            ).astype(jnp.bfloat16)

        @pl.when(l > 0)
        def _():
            # Reads the FULL act buffer (written by layer l-1) before any act
            # write of layer l below -> a single activation buffer suffices.
            h_ref[...] = jnp.dot(
                act_ref[...], w, preferred_element_type=jnp.float32
            ).astype(jnp.bfloat16)

    # A_hat[row tile] @ H: f32 accumulation on the MXU, bias add in f32.
    y = (jnp.dot(a_ref[...], h_ref[...], preferred_element_type=jnp.float32)
         + b_ref[0])

    @pl.when(l < num_layers - 1)
    def _store_act():
        # ReLU + bf16 activation stash for the next layer (non-final layers only).
        row0 = pl.multiple_of(r * tm, tm)
        act_ref[pl.ds(row0, tm), :] = jnp.maximum(y, 0.0).astype(jnp.bfloat16)

    @pl.when(l == num_layers - 1)
    def _store_out():
        o_ref[...] = y            # lane-dense f32 store, final layer only


# ----------------------------------------------------------------------------
# Glue: dense normalized adjacency (matches PyG GCNConv gcn_norm)
# ----------------------------------------------------------------------------
def normalized_adjacency(edge_index: jax.Array, num_nodes: int) -> jax.Array:
    """Ahat[i, j] = deg_i^{-1/2} * deg_j^{-1/2} * A_selfloop[i, j]."""
    src = edge_index[0]
    dst = edge_index[1]
    loop = jnp.arange(num_nodes, dtype=edge_index.dtype)
    src = jnp.concatenate([src, loop])
    dst = jnp.concatenate([dst, loop])
    adj = jnp.zeros((num_nodes, num_nodes), jnp.float32).at[dst, src].add(1.0)
    deg = jnp.zeros((num_nodes,), jnp.float32).at[dst].add(1.0)
    deg_inv_sqrt = jnp.where(deg > 0, 1.0 / jnp.sqrt(deg), 0.0)
    return deg_inv_sqrt[:, None] * adj * deg_inv_sqrt[None, :]


# ----------------------------------------------------------------------------
# VMEM accounting & tiling choice (generation aware)
# ----------------------------------------------------------------------------
def _round_up(x: int, m: int) -> int:
    return ((x + m - 1) // m) * m


def _physical_vmem_bytes() -> int:
    try:
        return int(pltpu.get_tpu_info().vmem_capacity_bytes)
    except Exception:
        return 64 * 1024 * 1024          # conservative fallback (v7x per-core)


def _resident_vmem_bytes(n_pad: int, c_pad: int) -> int:
    # Conservative: assumes double-buffered A_hat / X (i.e. the pl.Buffered(1)
    # fallback path), so the chosen tiling fits either way.
    return (2 * n_pad * n_pad * 2        # A_hat (bf16)
            + 2 * n_pad * c_pad * 2      # X (bf16)
            + 2 * c_pad * c_pad * 2      # W_l (bf16, double-buffered)
            + 2 * 2 * c_pad * 4          # b_l (f32)
            + 2 * n_pad * c_pad * 4      # output block (f32)
            + n_pad * c_pad * 2          # H scratch (bf16)
            + n_pad * c_pad * 2)         # activation scratch (bf16)


def _streaming_vmem_bytes(tm: int, n_pad: int, c_pad: int) -> int:
    return (2 * tm * n_pad * 2           # A_hat row blocks (double-buffered)
            + 2 * n_pad * c_pad * 2      # X
            + 2 * c_pad * c_pad * 2      # W_l
            + 2 * 2 * c_pad * 4          # b_l
            + 2 * tm * c_pad * 4         # output blocks
            + n_pad * c_pad * 2          # H
            + n_pad * c_pad * 2)         # act


def _choose_row_tiling(n: int, c_pad: int, budget: int):
    """Returns (n_pad, tm, resident)."""
    n_pad = max(_round_up(n, 128), 128)              # lane-dense A_hat rows/cols
    if _resident_vmem_bytes(n_pad, c_pad) <= budget:
        return n_pad, n_pad, True                    # A_hat fully resident
    for tm in (512, 256, 128):
        if n_pad % tm == 0 and _streaming_vmem_bytes(tm, n_pad, c_pad) <= budget:
            return n_pad, tm, False
    # TODO(synk): for very large meshes add a K-tile grid axis over A_hat's
    # columns (f32 accumulator scratch) and/or a sparse gather/scatter
    # formulation to avoid the dense O(N^2) adjacency altogether.
    return n_pad, 128, False


# ----------------------------------------------------------------------------
# Wrapper: padding, tiling, single fused pallas_call
# ----------------------------------------------------------------------------
def mesh_decoder_forward(params, x: jax.Array, edge_index: jax.Array) -> jax.Array:
    n, c_in = x.shape
    num_layers = len(params)
    c_out_final = params[-1]["w"].shape[1]

    c_max = max([c_in] + [p["w"].shape[1] for p in params])
    c_pad = _round_up(max(c_max, 128), 128)          # lane-dense channels

    phys_vmem = _physical_vmem_bytes()
    vmem_cap = phys_vmem - (8 << 20)                 # headroom for internal scratch
    budget = vmem_cap * 9 // 10

    n_pad, tm, resident = _choose_row_tiling(n, c_pad, budget)
    n_row_tiles = n_pad // tm

    # Dense normalized adjacency (plain JAX), padded + cast to bf16 for the MXU.
    # Padded rows/cols of A_hat are zero: padded activation rows only ever hold
    # the bias (then ReLU) and are cancelled on the next layer by A_hat's zero
    # padded columns, then sliced off at the end.
    a_hat = normalized_adjacency(edge_index, n)
    a_hat_bf = (jnp.zeros((n_pad, n_pad), jnp.float32)
                .at[:n, :n].set(a_hat)).astype(jnp.bfloat16)
    # TODO(synk): optional int8 (v5e/v6e) / fp8-e4m3 (v7x) quantization of A_hat
    # with a per-matrix scale to halve its HBM/VMEM footprint.

    x_bf = (jnp.zeros((n_pad, c_pad), jnp.float32)
            .at[:n, :c_in].set(x)).astype(jnp.bfloat16)

    # Stack zero-padded per-layer weights / biases.
    w_list, b_list = [], []
    for p in params:
        w, b = p["w"], p["b"]
        cin, cout = w.shape
        w_list.append(jnp.zeros((c_pad, c_pad), jnp.float32).at[:cin, :cout].set(w))
        b_list.append(jnp.zeros((1, c_pad), jnp.float32).at[0, :cout].set(b))
    w_stack = jnp.stack(w_list).astype(jnp.bfloat16)   # (L, Cpad, Cpad) bf16
    b_stack = jnp.stack(b_list)                        # (L, 1, Cpad)    f32

    kernel = functools.partial(_fused_gcn_kernel, num_layers=num_layers, tm=tm)

    # Scoped-VMEM limit: always passed (v5e default is only 16 MiB), never above
    # physical capacity (v7x has 64 MiB).
    vmem_est = (_resident_vmem_bytes(n_pad, c_pad) if resident
                else _streaming_vmem_bytes(tm, n_pad, c_pad))
    vmem_limit = int(min(vmem_cap, max(vmem_est * 5 // 4, 32 << 20)))

    # Cost estimate: A_hat (and the per-layer stale output write-back) count once
    # per layer in the streaming regime, once in the resident regime.
    a_passes = 1 if resident else num_layers
    flops = num_layers * (2 * n_pad * c_pad * c_pad + 2 * n_pad * n_pad * c_pad)
    bytes_accessed = (a_passes * a_hat_bf.size * 2 + x_bf.size * 2
                      + w_stack.size * 2 + b_stack.size * 4
                      + a_passes * n_pad * c_pad * 4)

    def make_in_specs(single_buffer_constants: bool):
        const_kw = (dict(pipeline_mode=pl.Buffered(1))
                    if single_buffer_constants else {})
        a_kw = const_kw if resident else {}       # A_hat constant only if resident
        return [
            pl.BlockSpec((tm, n_pad), lambda l, r: (r, 0), **a_kw),       # A rows
            pl.BlockSpec((n_pad, c_pad), lambda l, r: (0, 0), **const_kw),  # X
            pl.BlockSpec((1, c_pad, c_pad), lambda l, r: (l, 0, 0)),       # W_l
            pl.BlockSpec((1, 1, c_pad), lambda l, r: (l, 0, 0)),           # b_l
        ]

    def run(in_specs):
        return pl.pallas_call(
            kernel,
            out_shape=jax.ShapeDtypeStruct((n_pad, c_pad), jnp.float32),
            grid_spec=pltpu.PrefetchScalarGridSpec(
                num_scalar_prefetch=0,
                grid=(num_layers, n_row_tiles),
                in_specs=in_specs,
                out_specs=pl.BlockSpec((tm, c_pad), lambda l, r: (r, 0)),
                scratch_shapes=[
                    pltpu.VMEM((n_pad, c_pad), jnp.bfloat16),   # H = act @ W
                    pltpu.VMEM((n_pad, c_pad), jnp.bfloat16),   # activations
                ],
            ),
            compiler_params=pltpu.CompilerParams(
                # Both axes carry dependencies through the H/act scratch.
                # TODO(synk): v7x dual-TensorCore split of the row-tile axis via
                # pl.core_map + VMEM_SHARED scratch for H/act.
                dimension_semantics=("arbitrary", "arbitrary"),
                vmem_limit_bytes=vmem_limit,
            ),
            cost_estimate=pl.CostEstimate(
                flops=flops, transcendentals=0, bytes_accessed=bytes_accessed),
        )(a_hat_bf, x_bf, w_stack, b_stack)

    try:
        out_pad = jax.block_until_ready(run(make_in_specs(True)))
    except Exception:
        # pl.Buffered(1) pipeline_mode not accepted -> default double-buffering.
        out_pad = run(make_in_specs(False))

    return out_pad[:n, :c_out_final]


# ----------------------------------------------------------------------------
# Pure-JAX reference (mirrors the kernel's bf16 input quantization)
# ----------------------------------------------------------------------------
def mesh_decoder_reference(params, x, edge_index):
    n = x.shape[0]
    a = normalized_adjacency(edge_index, n).astype(jnp.bfloat16).astype(jnp.float32)
    h = x.astype(jnp.bfloat16).astype(jnp.float32)
    num_layers = len(params)
    for i, p in enumerate(params):
        w = p["w"].astype(jnp.bfloat16).astype(jnp.float32)
        hw = (h @ w).astype(jnp.bfloat16).astype(jnp.float32)
        h = a @ hw + p["b"][None, :]
        if i < num_layers - 1:
            h = jnp.maximum(h, 0.0).astype(jnp.bfloat16).astype(jnp.float32)
    return h


# ----------------------------------------------------------------------------
# Parameter init (GCNConv: glorot-uniform W, zero bias)
# ----------------------------------------------------------------------------
def glorot_uniform(key, shape):
    fan_in, fan_out = shape
    limit = jnp.sqrt(6.0 / (fan_in + fan_out))
    return jax.random.uniform(key, shape, jnp.float32, -limit, limit)


def init_mesh_decoder_params(key, hidden_channels: int, out_channels: int,
                             num_layers: int = 3):
    dims = [(hidden_channels, hidden_channels)] * (num_layers - 1) + \
           [(hidden_channels, out_channels)]
    params = []
    for i, (cin, cout) in enumerate(dims):
        wkey = jax.random.fold_in(key, i)
        params.append({
            "w": glorot_uniform(wkey, (cin, cout)),
            "b": jnp.zeros((cout,), jnp.float32),
        })
    return params


# ----------------------------------------------------------------------------
# Main
# ----------------------------------------------------------------------------
if __name__ == "__main__":
    key = jax.random.PRNGKey(0)

    num_nodes = 16
    hidden_channels = 32
    out_channels = 3
    num_layers = 3

    xkey, pkey = jax.random.split(key)
    x = jax.random.normal(xkey, (num_nodes, hidden_channels), jnp.float32)

    # small deterministic ring graph (bidirectional edges)
    src = jnp.arange(num_nodes, dtype=jnp.int32)
    dst = (src + 1) % num_nodes
    edge_index = jnp.stack(
        [jnp.concatenate([src, dst]), jnp.concatenate([dst, src])], axis=0
    )  # (2, 2*num_nodes)

    params = init_mesh_decoder_params(pkey, hidden_channels, out_channels,
                                      num_layers)

    out = mesh_decoder_forward(params, x, edge_index)
    out = jax.block_until_ready(out)

    assert out.shape == (num_nodes, out_channels)

    ref = mesh_decoder_reference(params, x, edge_index)
    max_err = float(jnp.max(jnp.abs(out - ref)))
    assert max_err < 1e-1, f"max abs error vs reference: {max_err}"

    print("KERNEL_OK")
</pallas_src>

<mosaic_0001>
module attributes {stable_mosaic.version = 11 : i64} {
  func.func @_fused_gcn_kernel(%arg0: i32, %arg1: i32, %arg2: memref<128x128xbf16, #tpu.memory_space<vmem>>, %arg3: memref<128x128xbf16, #tpu.memory_space<vmem>>, %arg4: memref<1x128x128xbf16, #tpu.memory_space<vmem>>, %arg5: memref<1x1x128xf32, #tpu.memory_space<vmem>>, %arg6: memref<128x128xf32, #tpu.memory_space<vmem>>, %arg7: memref<128x128xbf16, #tpu.memory_space<vmem>>, %arg8: memref<128x128xbf16, #tpu.memory_space<vmem>>) attributes {dimension_semantics = [#tpu.dimension_semantics<arbitrary>, #tpu.dimension_semantics<arbitrary>], iteration_bounds = array<i64: 3, 1>, scalar_prefetch = 0 : i64, scratch_operands = 2 : i64, tpu.core_type = #tpu.core_type<tc>, window_params = [{pipeline_mode = #tpu.pipeline_mode<synchronous>, transform_indices = @transform_0, window_bounds = array<i64: 128, 128>}, {pipeline_mode = #tpu.pipeline_mode<synchronous>, transform_indices = @transform_1, window_bounds = array<i64: 128, 128>}, {transform_indices = @transform_2, window_bounds = array<i64: 1, 128, 128>}, {transform_indices = @transform_3, window_bounds = array<i64: 1, 1, 128>}, {transform_indices = @transform_4, window_bounds = array<i64: 128, 128>}]} {
    %c0_i32 = arith.constant 0 : i32
    %0 = arith.cmpi eq, %arg1, %c0_i32 : i32
    %1 = arith.extui %0 : i1 to i32
    %c0_i32_0 = arith.constant 0 : i32
    %2 = arith.cmpi ne, %1, %c0_i32_0 : i32
    scf.if %2 {
      %c0_10 = arith.constant 0 : index
      %c0_11 = arith.constant 0 : index
      %c0_12 = arith.constant 0 : index
      %16 = vector.load %arg4[%c0_10, %c0_11, %c0_12] : memref<1x128x128xbf16, #tpu.memory_space<vmem>>, vector<1x128x128xbf16>
      %17 = vector.shape_cast %16 : vector<1x128x128xbf16> to vector<128x128xbf16>
      %c0_i32_13 = arith.constant 0 : i32
      %18 = arith.cmpi eq, %arg0, %c0_i32_13 : i32
      %19 = arith.extui %18 : i1 to i32
      %c0_i32_14 = arith.constant 0 : i32
      %20 = arith.cmpi ne, %19, %c0_i32_14 : i32
      scf.if %20 {
        %c0_17 = arith.constant 0 : index
        %c0_18 = arith.constant 0 : index
        %24 = vector.load %arg3[%c0_17, %c0_18] : memref<128x128xbf16, #tpu.memory_space<vmem>>, vector<128x128xbf16>
        %cst_19 = arith.constant dense<0.000000e+00> : vector<128x128xf32>
        %25 = tpu.matmul %24, %17, %cst_19 {dimension_numbers = #tpu.dot_dimension_numbers<[1], [0], [0], [1], [0, 0, 1, 1], [], []>} : vector<128x128xbf16>, vector<128x128xbf16>, vector<128x128xf32> -> vector<128x128xf32>
        %26 = arith.truncf %25 : vector<128x128xf32> to vector<128x128xbf16>
        %c0_20 = arith.constant 0 : index
        %c0_21 = arith.constant 0 : index
        %27 = vector.load %arg7[%c0_20, %c0_21] : memref<128x128xbf16, #tpu.memory_space<vmem>>, vector<128x128xbf16>
        tpu.vector_store %arg7[%c0_20, %c0_21], %26 {strides = array<i32>} : memref<128x128xbf16, #tpu.memory_space<vmem>>, vector<128x128xbf16>,
      } else {
      }
      %c0_i32_15 = arith.constant 0 : i32
      %21 = arith.cmpi sgt, %arg0, %c0_i32_15 : i32
      %22 = arith.extui %21 : i1 to i32
      %c0_i32_16 = arith.constant 0 : i32
      %23 = arith.cmpi ne, %22, %c0_i32_16 : i32
      scf.if %23 {
        %c0_17 = arith.constant 0 : index
        %c0_18 = arith.constant 0 : index
        %24 = vector.load %arg8[%c0_17, %c0_18] : memref<128x128xbf16, #tpu.memory_space<vmem>>, vector<128x128xbf16>
        %cst_19 = arith.constant dense<0.000000e+00> : vector<128x128xf32>
        %25 = tpu.matmul %24, %17, %cst_19 {dimension_numbers = #tpu.dot_dimension_numbers<[1], [0], [0], [1], [0, 0, 1, 1], [], []>} : vector<128x128xbf16>, vector<128x128xbf16>, vector<128x128xf32> -> vector<128x128xf32>
        %26 = arith.truncf %25 : vector<128x128xf32> to vector<128x128xbf16>
        %c0_20 = arith.constant 0 : index
        %c0_21 = arith.constant 0 : index
        %27 = vector.load %arg7[%c0_20, %c0_21] : memref<128x128xbf16, #tpu.memory_space<vmem>>, vector<128x128xbf16>
        tpu.vector_store %arg7[%c0_20, %c0_21], %26 {strides = array<i32>} : memref<128x128xbf16, #tpu.memory_space<vmem>>, vector<128x128xbf16>,
      } else {
      }
    } else {
    }
    %c0 = arith.constant 0 : index
    %c0_1 = arith.constant 0 : index
    %3 = vector.load %arg2[%c0, %c0_1] : memref<128x128xbf16, #tpu.memory_space<vmem>>, vector<128x128xbf16>
    %c0_2 = arith.constant 0 : index
    %c0_3 = arith.constant 0 : index
    %4 = vector.load %arg7[%c0_2, %c0_3] : memref<128x128xbf16, #tpu.memory_space<vmem>>, vector<128x128xbf16>
    %cst = arith.constant dense<0.000000e+00> : vector<128x128xf32>
    %5 = tpu.matmul %3, %4, %cst {dimension_numbers = #tpu.dot_dimension_numbers<[1], [0], [0], [1], [0, 0, 1, 1], [], []>} : vector<128x128xbf16>, vector<128x128xbf16>, vector<128x128xf32> -> vector<128x128xf32>
    %c0_4 = arith.constant 0 : index
    %c0_5 = arith.constant 0 : index
    %c0_6 = arith.constant 0 : index
    %6 = vector.load %arg5[%c0_4, %c0_5, %c0_6] : memref<1x1x128xf32, #tpu.memory_space<vmem>>, vector<1x1x128xf32>
    %7 = vector.shape_cast %6 : vector<1x1x128xf32> to vector<1x128xf32>
    %8 = vector.broadcast %7 : vector<1x128xf32> to vector<128x128xf32>
    %9 = arith.addf %5, %8 : vector<128x128xf32>
    %c2_i32 = arith.constant 2 : i32
    %10 = arith.cmpi slt, %arg0, %c2_i32 : i32
    %11 = arith.extui %10 : i1 to i32
    %c0_i32_7 = arith.constant 0 : i32
    %12 = arith.cmpi ne, %11, %c0_i32_7 : i32
    scf.if %12 {
      %c128_i32 = arith.constant 128 : i32
      %16 = arith.muli %arg1, %c128_i32 : i32
      %17 = tpu.assume_multiple %16, 128 : i32
      %cst_10 = arith.constant 0.000000e+00 : f32
      %18 = vector.broadcast %cst_10 : f32 to vector<128x128xf32>
      %19 = arith.maximumf %9, %18 : vector<128x128xf32>
      %20 = arith.truncf %19 : vector<128x128xf32> to vector<128x128xbf16>
      %21 = arith.index_cast %17 : i32 to index
      %c0_11 = arith.constant 0 : index
      %22 = vector.load %arg8[%21, %c0_11] : memref<128x128xbf16, #tpu.memory_space<vmem>>, vector<128x128xbf16>
      tpu.vector_store %arg8[%21, %c0_11], %20 {strides = array<i32>} : memref<128x128xbf16, #tpu.memory_space<vmem>>, vector<128x128xbf16>,
    } else {
    }
    %c2_i32_8 = arith.constant 2 : i32
    %13 = arith.cmpi eq, %arg0, %c2_i32_8 : i32
    %14 = arith.extui %13 : i1 to i32
    %c0_i32_9 = arith.constant 0 : i32
    %15 = arith.cmpi ne, %14, %c0_i32_9 : i32
    scf.if %15 {
      %c0_10 = arith.constant 0 : index
      %c0_11 = arith.constant 0 : index
      %16 = vector.load %arg6[%c0_10, %c0_11] : memref<128x128xf32, #tpu.memory_space<vmem>>, vector<128x128xf32>
      tpu.vector_store %arg6[%c0_10, %c0_11], %9 {strides = array<i32>} : memref<128x128xf32, #tpu.memory_space<vmem>>, vector<128x128xf32>,
    } else {
    }
    return
  }
  func.func @transform_0(%arg0: i32, %arg1: i32) -> (i32, i32) {
    %c0_i32 = arith.constant 0 : i32
    %c0_i32_0 = arith.constant 0 : i32
    return %arg1, %c0_i32 : i32, i32
  }
  func.func @transform_1(%arg0: i32, %arg1: i32) -> (i32, i32) {
    %c0_i32 = arith.constant 0 : i32
    %c0_i32_0 = arith.constant 0 : i32
    %c0_i32_1 = arith.constant 0 : i32
    return %c0_i32, %c0_i32_0 : i32, i32
  }
  func.func @transform_2(%arg0: i32, %arg1: i32) -> (i32, i32, i32) {
    %c0_i32 = arith.constant 0 : i32
    %c0_i32_0 = arith.constant 0 : i32
    %c0_i32_1 = arith.constant 0 : i32
    return %arg0, %c0_i32, %c0_i32_0 : i32, i32, i32
  }
  func.func @transform_3(%arg0: i32, %arg1: i32) -> (i32, i32, i32) {
    %c0_i32 = arith.constant 0 : i32
    %c0_i32_0 = arith.constant 0 : i32
    %c0_i32_1 = arith.constant 0 : i32
    return %arg0, %c0_i32, %c0_i32_0 : i32, i32, i32
  }
  func.func @transform_4(%arg0: i32, %arg1: i32) -> (i32, i32) {
    %c0_i32 = arith.constant 0 : i32
    %c0_i32_0 = arith.constant 0 : i32
    return %arg1, %c0_i32 : i32, i32
  }
}

module attributes {stable_mosaic.version = 11 : i64} {
  func.func @_fused_gcn_kernel(%arg0: i32, %arg1: i32, %arg2: memref<128x128xbf16, #tpu.memory_space<vmem>>, %arg3: memref<128x128xbf16, #tpu.memory_space<vmem>>, %arg4: memref<1x128x128xbf16, #tpu.memory_space<vmem>>, %arg5: memref<1x1x128xf32, #tpu.memory_space<vmem>>, %arg6: memref<128x128xf32, #tpu.memory_space<vmem>>, %arg7: memref<128x128xbf16, #tpu.memory_space<vmem>>, %arg8: memref<128x128xbf16, #tpu.memory_space<vmem>>) attributes {dimension_semantics = [#tpu.dimension_semantics<arbitrary>, #tpu.dimension_semantics<arbitrary>], iteration_bounds = array<i64: 3, 1>, scalar_prefetch = 0 : i64, scratch_operands = 2 : i64, tpu.core_type = #tpu.core_type<tc>, window_params = [{transform_indices = @transform_0, window_bounds = array<i64: 128, 128>}, {pipeline_mode = #tpu.pipeline_mode<synchronous>, transform_indices = @transform_1, window_bounds = array<i64: 128, 128>}, {transform_indices = @transform_2, window_bounds = array<i64: 1, 128, 128>}, {transform_indices = @transform_3, window_bounds = array<i64: 1, 1, 128>}, {transform_indices = @transform_4, window_bounds = array<i64: 128, 128>}]} {
    %c0_i32 = arith.constant 0 : i32
    %0 = arith.cmpi eq, %arg1, %c0_i32 : i32
    %1 = arith.extui %0 : i1 to i32
    %c0_i32_0 = arith.constant 0 : i32
    %2 = arith.cmpi ne, %1, %c0_i32_0 : i32
    scf.if %2 {
      %c0_10 = arith.constant 0 : index
      %c0_11 = arith.constant 0 : index
      %c0_12 = arith.constant 0 : index
      %16 = vector.load %arg4[%c0_10, %c0_11, %c0_12] : memref<1x128x128xbf16, #tpu.memory_space<vmem>>, vector<1x128x128xbf16>
      %17 = vector.shape_cast %16 : vector<1x128x128xbf16> to vector<128x128xbf16>
      %c0_i32_13 = arith.constant 0 : i32
      %18 = arith.cmpi eq, %arg0, %c0_i32_13 : i32
      %19 = arith.extui %18 : i1 to i32
      %c0_i32_14 = arith.constant 0 : i32
      %20 = arith.cmpi ne, %19, %c0_i32_14 : i32
      scf.if %20 {
        %c0_17 = arith.constant 0 : index
        %c0_18 = arith.constant 0 : index
        %24 = vector.load %arg3[%c0_17, %c0_18] : memref<128x128xbf16, #tpu.memory_space<vmem>>, vector<128x128xbf16>
        %cst_19 = arith.constant dense<0.000000e+00> : vector<128x128xf32>
        %25 = tpu.matmul %24, %17, %cst_19 {dimension_numbers = #tpu.dot_dimension_numbers<[1], [0], [0], [1], [0, 0, 1, 1], [], []>} : vector<128x128xbf16>, vector<128x128xbf16>, vector<128x128xf32> -> vector<128x128xf32>
        %26 = arith.truncf %25 : vector<128x128xf32> to vector<128x128xbf16>
        %c0_20 = arith.constant 0 : index
        %c0_21 = arith.constant 0 : index
        %27 = vector.load %arg7[%c0_20, %c0_21] : memref<128x128xbf16, #tpu.memory_space<vmem>>, vector<128x128xbf16>
        tpu.vector_store %arg7[%c0_20, %c0_21], %26 {strides = array<i32>} : memref<128x128xbf16, #tpu.memory_space<vmem>>, vector<128x128xbf16>,
      } else {
      }
      %c0_i32_15 = arith.constant 0 : i32
      %21 = arith.cmpi sgt, %arg0, %c0_i32_15 : i32
      %22 = arith.extui %21 : i1 to i32
      %c0_i32_16 = arith.constant 0 : i32
      %23 = arith.cmpi ne, %22, %c0_i32_16 : i32
      scf.if %23 {
        %c0_17 = arith.constant 0 : index
        %c0_18 = arith.constant 0 : index
        %24 = vector.load %arg8[%c0_17, %c0_18] : memref<128x128xbf16, #tpu.memory_space<vmem>>, vector<128x128xbf16>
        %cst_19 = arith.constant dense<0.000000e+00> : vector<128x128xf32>
        %25 = tpu.matmul %24, %17, %cst_19 {dimension_numbers = #tpu.dot_dimension_numbers<[1], [0], [0], [1], [0, 0, 1, 1], [], []>} : vector<128x128xbf16>, vector<128x128xbf16>, vector<128x128xf32> -> vector<128x128xf32>
        %26 = arith.truncf %25 : vector<128x128xf32> to vector<128x128xbf16>
        %c0_20 = arith.constant 0 : index
        %c0_21 = arith.constant 0 : index
        %27 = vector.load %arg7[%c0_20, %c0_21] : memref<128x128xbf16, #tpu.memory_space<vmem>>, vector<128x128xbf16>
        tpu.vector_store %arg7[%c0_20, %c0_21], %26 {strides = array<i32>} : memref<128x128xbf16, #tpu.memory_space<vmem>>, vector<128x128xbf16>,
      } else {
      }
    } else {
    }
    %c0 = arith.constant 0 : index
    %c0_1 = arith.constant 0 : index
    %3 = vector.load %arg2[%c0, %c0_1] : memref<128x128xbf16, #tpu.memory_space<vmem>>, vector<128x128xbf16>
    %c0_2 = arith.constant 0 : index
    %c0_3 = arith.constant 0 : index
    %4 = vector.load %arg7[%c0_2, %c0_3] : memref<128x128xbf16, #tpu.memory_space<vmem>>, vector<128x128xbf16>
    %cst = arith.constant dense<0.000000e+00> : vector<128x128xf32>
    %5 = tpu.matmul %3, %4, %cst {dimension_numbers = #tpu.dot_dimension_numbers<[1], [0], [0], [1], [0, 0, 1, 1], [], []>} : vector<128x128xbf16>, vector<128x128xbf16>, vector<128x128xf32> -> vector<128x128xf32>
    %c0_4 = arith.constant 0 : index
    %c0_5 = arith.constant 0 : index
    %c0_6 = arith.constant 0 : index
    %6 = vector.load %arg5[%c0_4, %c0_5, %c0_6] : memref<1x1x128xf32, #tpu.memory_space<vmem>>, vector<1x1x128xf32>
    %7 = vector.shape_cast %6 : vector<1x1x128xf32> to vector<1x128xf32>
    %8 = vector.broadcast %7 : vector<1x128xf32> to vector<128x128xf32>
    %9 = arith.addf %5, %8 : vector<128x128xf32>
    %c2_i32 = arith.constant 2 : i32
    %10 = arith.cmpi slt, %arg0, %c2_i32 : i32
    %11 = arith.extui %10 : i1 to i32
    %c0_i32_7 = arith.constant 0 : i32
    %12 = arith.cmpi ne, %11, %c0_i32_7 : i32
    scf.if %12 {
      %c128_i32 = arith.constant 128 : i32
      %16 = arith.muli %arg1, %c128_i32 : i32
      %17 = tpu.assume_multiple %16, 128 : i32
      %cst_10 = arith.constant 0.000000e+00 : f32
      %18 = vector.broadcast %cst_10 : f32 to vector<128x128xf32>
      %19 = arith.maximumf %9, %18 : vector<128x128xf32>
      %20 = arith.truncf %19 : vector<128x128xf32> to vector<128x128xbf16>
      %21 = arith.index_cast %17 : i32 to index
      %c0_11 = arith.constant 0 : index
      %22 = vector.load %arg8[%21, %c0_11] : memref<128x128xbf16, #tpu.memory_space<vmem>>, vector<128x128xbf16>
      tpu.vector_store %arg8[%21, %c0_11], %20 {strides = array<i32>} : memref<128x128xbf16, #tpu.memory_space<vmem>>, vector<128x128xbf16>,
    } else {
    }
    %c2_i32_8 = arith.constant 2 : i32
    %13 = arith.cmpi eq, %arg0, %c2_i32_8 : i32
    %14 = arith.extui %13 : i1 to i32
    %c0_i32_9 = arith.constant 0 : i32
    %15 = arith.cmpi ne, %14, %c0_i32_9 : i32
    scf.if %15 {
      %c0_10 = arith.constant 0 : index
      %c0_11 = arith.constant 0 : index
      %16 = vector.load %arg6[%c0_10, %c0_11] : memref<128x128xf32, #tpu.memory_space<vmem>>, vector<128x128xf32>
      tpu.vector_store %arg6[%c0_10, %c0_11], %9 {strides = array<i32>} : memref<128x128xf32, #tpu.memory_space<vmem>>, vector<128x128xf32>,
    } else {
    }
    return
  }
  func.func @transform_0(%arg0: i32, %arg1: i32) -> (i32, i32) {
    %c0_i32 = arith.constant 0 : i32
    %c0_i32_0 = arith.constant 0 : i32
    return %arg1, %c0_i32 : i32, i32
  }
  func.func @transform_1(%arg0: i32, %arg1: i32) -> (i32, i32) {
    %c0_i32 = arith.constant 0 : i32
    %c0_i32_0 = arith.constant 0 : i32
    %c0_i32_1 = arith.constant 0 : i32
    return %c0_i32, %c0_i32_0 : i32, i32
  }
  func.func @transform_2(%arg0: i32, %arg1: i32) -> (i32, i32, i32) {
    %c0_i32 = arith.constant 0 : i32
    %c0_i32_0 = arith.constant 0 : i32
    %c0_i32_1 = arith.constant 0 : i32
    return %arg0, %c0_i32, %c0_i32_0 : i32, i32, i32
  }
  func.func @transform_3(%arg0: i32, %arg1: i32) -> (i32, i32, i32) {
    %c0_i32 = arith.constant 0 : i32
    %c0_i32_0 = arith.constant 0 : i32
    %c0_i32_1 = arith.constant 0 : i32
    return %arg0, %c0_i32, %c0_i32_0 : i32, i32, i32
  }
  func.func @transform_4(%arg0: i32, %arg1: i32) -> (i32, i32) {
    %c0_i32 = arith.constant 0 : i32
    %c0_i32_0 = arith.constant 0 : i32
    return %arg1, %c0_i32 : i32, i32
  }
}

</mosaic_0001>

<bundles_post_ra>
// kernel: tpu_custom_call.1
= control target key start
LH: loop header
LB: loop body
LE: loop exit
PB: predicated region body
PF: predicated region fallthrough
CT: control target
= control target key end

     0   :  { %9 = vsyncpa [#allocation5], 0  ;;  %s2414_s0 = inlined_call_operand.hbm [shape: bf16[128,128], index: 0, kind: input, shape index: {}]   ;;  %s2415_s1 = inlined_call_operand.hbm [shape: bf16[128,128], index: 1, kind: input, shape index: {}]   ;;  %s2416_s2 = inlined_call_operand.hbm [shape: bf16[3,128,128], index: 2, kind: input, shape index: {}]   ;;  %s2417_s3 = inlined_call_operand.vmem [shape: f32[3,1,128], index: 3, kind: input, shape index: {}]   ;;  %s2418_s4 = inlined_call_operand.hbm [shape: f32[128,128], index: 4, kind: output, shape index: {}]  }
   0x1   :  { %10 = vsyncpa [#allocation8], 0 }
   0x2   :  { %11 = vsyncpa [#allocation6], 0  ;;  %s2160_s15 = smov 0   ;;  %s2162_s16 = smov 0  }
   0x3   :  { %s2164_s17 = smov 0   ;;  %s2166_s18 = smov 0  }
   0x4   :  { %s2168_s19 = smov 0   ;;  %s2170_s20 = smov 0  }
   0x5 LB: > { %s2189_s21 = sadd.s32 4294967295, %s2125_s20   ;;  %p90_p0 = scmp.ne.s32.totalorder %s2113_s17, %s2109_s16  ;;  %s2125_s20 = sphi %s2170_s20, %s17_s20   ;;  %s2121_s19 = sphi %s2168_s19, %s2434_s19   ;;  %s2117_s18 = sphi %s2166_s18, %s2433_s18   ;;  %s2113_s17 = sphi %s2164_s17, %s2432_s17   ;;  %s2109_s16 = sphi %s2162_s16, %s2431_s16   ;;  %s2105_s15 = sphi %s2160_s15, %s2430_s15  }
   0x6   : > { %p91_p1 = scmp.eq.s32.totalorder %s2125_s20, 0  ;;  %p96_p2 = scmp.ne.s32.totalorder %s2109_s16, %s2105_s15 }
   0x7   : > { %p2419_p3 = scmp.eq.s32.totalorder %s2189_s21, 0  ;;  %p1342_p4 = scmp.ge.s32.totalorder %s2125_s20, 1 }
   0x8   : > { %p92_p5 = por %p91_p1, %p90_p0  ;;  %p159_p6 = scmp.lt.s32.totalorder %s2125_s20, 4 }
   0x9   : > { %p2200_p7 = por %p2419_p3, %p96_p2  ;;  %s2127_s24 = smov [#allocation4]  }
   0xa   : > { %p2204_p8 = pnand %p1342_p4, %p159_p6  ;;  %s174_s25 = sshll.u32 %s2127_s24, 4  ;;  %s175_s25 = int_to_ptr.vmem [resolvable:$true] %s174_s25 }
   0xb   : > { %p1867_p11 = scmp.lt.s32.totalorder %s2125_s20, 3  ;;  %s1970_s28 = scalar_lea.vmem %s175_s25, 1024 }
   0xc   : > { %p1854_p9 = pneg %p2204_p8  ;;  %p1971_p0 = scmp.ne.s32.totalorder %s175_s25, %s1970_s28 }
   0xd   : > { %p2217_p12 = pnand %p1867_p11, %p92_p5  ;;  %p1978_p4 = scmp.lt.s32.totalorder %s175_s25, %s175_s25 }
   0xe   : > { %p2212_p10 = pnand %p1854_p9, %p2419_p3  ;;  %p1979_p6 = scmp.lt.s32.totalorder %s1970_s28, %s1970_s28 }
  0x10   : > { %p1961_p13 = pneg %p2212_p10  ;;  %p1980_p9 = por %p1979_p6, %p1978_p4 }
  0x12   : > { %p1973_p1 = pnand %p1971_p0, %p1961_p13 }
  0x14   : > { %p1974_p2 = pneg %p1973_p1 }
  0x16   : > { %p1981_p3 = pnand %p1980_p9, %p1974_p2 }
  0x18   : > { %1984 = shalt.err (!%p1981_p3)
}
  0x19   : > { %s2420_s29 = smov 64   ;;  %s2129_s30 = smov 4  }
  0x1a   : > { %1857 = dma.hbm_to_vmem [thread:$0]  (!%p2212_p10), %s2414_s0, 1024, %s175_s25, [#allocation5], %s2420_s29, %s2420_s29, %s2129_s30  }
  0x1b   : > { %s2130_s7 = smov [#allocation7]  }
  0x1c   : > { %s187_s8 = sshll.u32 %s2130_s7, 4  ;;  %s188_s8 = int_to_ptr.vmem [resolvable:$true] %s187_s8 }
  0x1d   : > { %s1996_s9 = scalar_lea.vmem %s188_s8, 1024  ;;  %p2004_p0 = scmp.lt.s32.totalorder %s188_s8, %s188_s8 }
  0x1e   : > { %p1997_p5 = scmp.ne.s32.totalorder %s188_s8, %s1996_s9  ;;  %p2005_p1 = scmp.lt.s32.totalorder %s1996_s9, %s1996_s9 }
  0x20   : > { %p1999_p3 = pnand %p1997_p5, %p1961_p13  ;;  %p2006_p2 = por %p2005_p1, %p2004_p0 }
  0x22   : > { %p2000_p11 = pneg %p1999_p3 }
  0x24   : > { %p2007_p4 = pnand %p2006_p2, %p2000_p11 }
  0x26   : > { %2010 = shalt.err (!%p2007_p4)
}
  0x27   : > { %1860 = dma.hbm_to_vmem [thread:$0]  (!%p2212_p10), %s2415_s1, 1024, %s188_s8, [#allocation8], %s2420_s29, %s2420_s29, %s2129_s30  }
  0x28   : > { %s29_s12 = sadd.s32 1, %s2121_s19  ;;  %s83_s13 = sadd.s32 1, %s2113_s17 }
  0x29   : > { %p31_p13 = scmp.ge.s32.totalorder %s29_s12, 3  ;;  %s201_s14 = sand.u32 1, %s2125_s20  }
  0x2a   : > { %s203_s15 = sand.u32 1, %s2113_s17   ;;  %s1458_s25 = sshll.u32 %s2121_s19, 10 }
  0x2b   : > { %s2436_s12 = smov (%p31_p13, %s29_s12), 0  ;;  %s1346_s24 = sshll.u32 %s203_s15, 6 }
  0x2c   : > { %s80_s26 = ssub.s32 %s2121_s19, %s2436_s12  ;;  %s211_s6 = scalar_lea.hbm %s2416_s2, %s1458_s25 }
  0x2d   : > { %p81_p6 = scmp.eq.s32.totalorder %s80_s26, 0  ;;  %s205_s7 = scalar_lea.vmem [#allocation9], %s1346_s24 }
  0x2e   : > { %s212_s9 = sshll.u32 %s205_s7, 4  ;;  %s202_s10 = scalar_lea.sflag [#allocation5], %s201_s14  ;;  %s213_s9 = int_to_ptr.vmem [resolvable:$true] %s212_s9 }
  0x2f   : > { %s2258_s8 = scalar_select %p81_p6, %s2113_s17, %s83_s13  }
  0x30   : > { %p2013_p10 = pneg %p2217_p12  ;;  %s2024_s11 = scalar_lea.vmem %s213_s9, 1024 }
  0x31   : > { %p2025_p9 = scmp.ne.s32.totalorder %s213_s9, %s2024_s11  ;;  %s2131_s15 = smov [#allocation9]  }
  0x32   : > { %s2029_s29 = sshll.u32 %s2131_s15, 4  ;;  %s2030_s29 = int_to_ptr.vmem [resolvable:$false] %s2029_s29 }
  0x33   : > { %p2027_p5 = pnand %p2025_p9, %p2013_p10  ;;  %s2031_s26 = scalar_lea.vmem %s2030_s29, 2048 }
  0x34   : > { %p2032_p11 = scmp.lt.s32.totalorder %s213_s9, %s2030_s29  ;;  %p2033_p0 = scmp.lt.s32.totalorder %s2031_s26, %s2024_s11 }
  0x35   : > { %p2028_p3 = pneg %p2027_p5 }
  0x36   : > { %p2034_p1 = por %p2033_p0, %p2032_p11 }
  0x38   : > { %p2035_p2 = pnand %p2034_p1, %p2028_p3 }
  0x3a   : > { %2038 = shalt.err (!%p2035_p2)
}
  0x3b   : > { %s2425_s13 = smov 64   ;;  %230 = sbr.rel (%p2204_p8) target bundleno = 866 (0x362), region = 36 }
  0x3c   : > { %1864 = dma.hbm_to_vmem [thread:$0]  (!%p2217_p12), %s211_s6, 1024, %s213_s9, %s202_s10, %s2425_s13, %s2425_s13, %s2129_s30  }
  0x3d   : > { %p2426_p4 = scmp.eq.s32.totalorder (!%p2204_p8), %s2189_s21, 0 }
  0x40   : > { %2088 = dma.done.wait (%p2426_p4), [#allocation5], 1024   ;;  %p2427_p13 = pmov %p2426_p4 }
  0x41   : > { %p2428_p6 = pmov %p2426_p4 }
  0x42   : > { %2090 = vsyncadd (%p2427_p13), [#allocation5], 4294966272 }
  0x43   : > { %2092 = dma.done.wait (%p2428_p6), [#allocation8], 1024   ;;  %p2429_p10 = pmov %p2426_p4 }
  0x44   : > { %s240_s27 = sand.u32 1, %s2189_s21   ;;  %s242_s29 = sand.u32 1, %s2109_s16  }
  0x45   : > { %2094 = vsyncadd (%p2429_p10), [#allocation8], 4294966272  ;;  %s1352_s30 = sshll.u32 %s242_s29, 6  ;;  %s241_s23 = scalar_lea.sflag [#allocation5], %s240_s27 }
  0x46   : > { %s244_s14 = scalar_lea.vmem [#allocation9], %s1352_s30 }
  0x47   : > { %2096 = dma.done.wait (%p2200_p7), %s241_s23, 1024  }
  0x48   : > { %2098 = vsyncadd (%p2200_p7), %s241_s23, 4294966272  ;;  %p268_p8 = scmp.lt.s32.totalorder %s2117_s18, 2  ;;  %v2291_v0 = vld [vmem:[%s244_s14] sm:$0xf]  ;;  %v2293_v1 = vld [vmem:[%s244_s14 + $0x4] sm:$0xf] }
  0x49   : > { %v2295_v2 = vld [vmem:[%s244_s14 + $0x8] sm:$0xf]  ;;  %v2297_v3 = vld [vmem:[%s244_s14 + $0xc] sm:$0xf]  ;;  %v2299_v4 = vld [vmem:[%s244_s14 + $0x10] sm:$0xf] }
  0x4a   : > { %s2285_s24 = scalar_select %p268_p8, %s2117_s18, 2  ;;  %v2301_v5 = vld [vmem:[%s244_s14 + $0x14] sm:$0xf]  ;;  %v2303_v6 = vld [vmem:[%s244_s14 + $0x18] sm:$0xf] }
  0x4b   : > { %v2305_v7 = vld [vmem:[%s244_s14 + $0x1c] sm:$0xf]  ;;  %v2307_v8 = vld [vmem:[%s244_s14 + $0x20] sm:$0xf]  ;;  %v2309_v9 = vld [vmem:[%s244_s14 + $0x24] sm:$0xf] }
  0x4c   : > { %s270_s5 = scalar_lea.vmem %s2417_s3, %s2285_s24  ;;  %v2311_v10 = vld [vmem:[%s244_s14 + $0x28] sm:$0xf]  ;;  %v2313_v11 = vld [vmem:[%s244_s14 + $0x2c] sm:$0xf]  ;;  %v2315_v12 = vld [vmem:[%s244_s14 + $0x30] sm:$0xf] }
  0x4d   : > { %v2317_v13 = vld [vmem:[%s244_s14 + $0x34] sm:$0xf]  ;;  %v2319_v14 = vld [vmem:[%s244_s14 + $0x38] sm:$0xf]  ;;  %v2321_v15 = vld [vmem:[%s244_s14 + $0x3c] sm:$0xf] }
  0x4e   : > { %p1353_p7 = scmp.ne.s32.totalorder %s2117_s18, 0 }
  0x50   : > { %296 = sbr.rel (%p1353_p7) target bundleno = 329 (0x149), region = 56 }
  0x55   : > { %v1369_v16 = vcombine.low %v2319_v14, %v2321_v15  ;;  %v1368_v17 = vcombine.low %v2315_v12, %v2317_v13  ;;  %v1927_v18 = vld [vmem:[#allocation7] sm:$0xff]   ;;  %v1367_v20 = vcombine.low %v2311_v10, %v2313_v11  ;;  %v1366_v21 = vcombine.low %v2307_v8, %v2309_v9  ;;  %v1929_v26 = vld [vmem:[#allocation7 + $0x8] sm:$0xff]   ;;  %v1931_v28 = vld [vmem:[#allocation7 + $0x10] sm:$0xff]  }
  0x56   : > { %v1928_v19 = vld [vmem:[#allocation7 + $0x20] sm:$0xff]   ;;  %1712 = vmatprep.mubr.bf16.mxu0 %v1927_v18  ;;  %v1365_v22 = vcombine.low %v2303_v6, %v2305_v7  ;;  %v1364_v23 = vcombine.low %v2299_v4, %v2301_v5  ;;  %v1363_v24 = vcombine.low %v2295_v2, %v2297_v3  ;;  %v1362_v25 = vcombine.low %v2291_v0, %v2293_v1  ;;  %v1930_v27 = vld [vmem:[#allocation7 + $0x28] sm:$0xff]   ;;  %v1932_v29 = vld [vmem:[#allocation7 + $0x30] sm:$0xff]  }
  0x57   : > { %1696 = vmatprep.subr.bf16.mxu0 %v1369_v16  ;;  %1792 = vmatprep.subr.bf16.mxu1 %v1369_v16  ;;  %v1933_v30 = vld [vmem:[#allocation7 + $0x18] sm:$0xff]  }
  0x58   : > { %1697 = vmatpush3.bf16.msra.mxu0 %v1369_v16  ;;  %1800 = vmatpush3.bf16.msra.mxu1 %v1369_v16  ;;  %v1934_v31 = vld [vmem:[#allocation7 + $0x38] sm:$0xff]  }
  0x59   : > { %1698 = vmatprep.subr.bf16.mxu0 %v1368_v17  ;;  %1793 = vmatprep.subr.bf16.mxu1 %v1368_v17 }
  0x5a   : > { %1720 = vmatprep.mubr.bf16.mxu1 %v1928_v19 }
  0x5c   : > { %1699 = vmatpush3.bf16.msra.mxu0 %v1368_v17  ;;  %1801 = vmatpush3.bf16.msra.mxu1 %v1368_v17 }
  0x5d   : > { %1700 = vmatprep.subr.bf16.mxu0 %v1367_v20  ;;  %1794 = vmatprep.subr.bf16.mxu1 %v1367_v20 }
  0x60   : > { %1701 = vmatpush3.bf16.msra.mxu0 %v1367_v20  ;;  %1802 = vmatpush3.bf16.msra.mxu1 %v1367_v20 }
  0x61   : > { %1702 = vmatprep.subr.bf16.mxu0 %v1366_v21  ;;  %1795 = vmatprep.subr.bf16.mxu1 %v1366_v21 }
  0x64   : > { %1703 = vmatpush3.bf16.msra.mxu0 %v1366_v21  ;;  %1803 = vmatpush3.bf16.msra.mxu1 %v1366_v21 }
  0x65   : > { %1704 = vmatprep.subr.bf16.mxu0 %v1365_v22  ;;  %1796 = vmatprep.subr.bf16.mxu1 %v1365_v22 }
  0x68   : > { %1705 = vmatpush3.bf16.msra.mxu0 %v1365_v22  ;;  %1804 = vmatpush3.bf16.msra.mxu1 %v1365_v22 }
  0x69   : > { %1706 = vmatprep.subr.bf16.mxu0 %v1364_v23  ;;  %1797 = vmatprep.subr.bf16.mxu1 %v1364_v23 }
  0x6c   : > { %1707 = vmatpush3.bf16.msra.mxu0 %v1364_v23  ;;  %1805 = vmatpush3.bf16.msra.mxu1 %v1364_v23 }
  0x6d   : > { %1708 = vmatprep.subr.bf16.mxu0 %v1363_v24  ;;  %1798 = vmatprep.subr.bf16.mxu1 %v1363_v24 }
  0x70   : > { %1709 = vmatpush3.bf16.msra.mxu0 %v1363_v24  ;;  %1806 = vmatpush3.bf16.msra.mxu1 %v1363_v24 }
  0x71   : > { %1710 = vmatprep.subr.bf16.mxu0 %v1362_v25  ;;  %1799 = vmatprep.subr.bf16.mxu1 %v1362_v25 }
  0x74   : > { %1711 = vmatpush3.bf16.msra.mxu0 %v1362_v25  ;;  %1807 = vmatpush3.bf16.msra.mxu1 %v1362_v25 }
  0x77   : > { %1713 = vmatmul.mubr.bf16.vlgmr.msra.gmra.mxu0 %v1929_v26  ;;  %1721 = vmatmul.mubr.bf16.vlgmr.msra.gmra.mxu1 %v1930_v27 }
  0x78   : > { %1716 = vmatprep.mubr.bf16.mxu0 %v1931_v28  ;;  %1724 = vmatprep.mubr.bf16.mxu1 %v1932_v29 }
  0x7f   : > { %1717 = vmatmul.mubr.bf16.gmra.mxu0 %v1933_v30  ;;  %1725 = vmatmul.mubr.bf16.gmra.mxu1 %v1934_v31 }
 0x137   : > { %v1714_v32 = vpop.f32.mrf.mxu0  ;;  %v1722_v33 = vpop.f32.mrf.mxu1 }
 0x139   : > { %v443_v34 = vpop.f32.mrf.mxu0  ;;  %v475_v35 = vpop.f32.mrf.mxu1 }
 0x13b   : > { %v1715_v36 = vpop.f32.mrf.mxu0  ;;  %v1723_v37 = vpop.f32.mrf.mxu1 }
 0x13c   : > { %v1515_v38 = vpack.c.bf16 %v1715_v36, %v1714_v32  ;;  %v1535_v39 = vpack.c.bf16 %v1723_v37, %v1722_v33 }
 0x13d   : > { %v446_v40 = vpop.f32.mrf.mxu0  ;;  %v478_v41 = vpop.f32.mrf.mxu1 }
 0x13e   : > { %1627 = vst [vmem:[#allocation2 + $0x8] sm:$0xff] %v1515_v38   ;;  %1631 = vst [vmem:[#allocation2 + $0x28] sm:$0xff] %v1535_v39   ;;  %v1510_v42 = vpack.c.bf16 %v446_v40, %v443_v34  ;;  %v1530_v43 = vpack.c.bf16 %v478_v41, %v475_v35 }
 0x13f   : > { %v1718_v44 = vpop.f32.mrf.mxu0  ;;  %v1726_v45 = vpop.f32.mrf.mxu1 }
 0x140   : > { %1511 = vst [vmem:[#allocation2] sm:$0xff] %v1510_v42   ;;  %1630 = vst [vmem:[#allocation2 + $0x20] sm:$0xff] %v1530_v43  }
 0x141   : > { %v459_v46 = vpop.f32.mrf.mxu0  ;;  %v491_v47 = vpop.f32.mrf.mxu1 }
 0x143   : > { %v1719_v48 = vpop.f32.mrf.mxu0  ;;  %v1727_v49 = vpop.f32.mrf.mxu1 }
 0x144   : > { %v1525_v50 = vpack.c.bf16 %v1719_v48, %v1718_v44  ;;  %v1545_v51 = vpack.c.bf16 %v1727_v49, %v1726_v45 }
 0x145   : > { %v462_v52 = vpop.f32.mrf.mxu0  ;;  %v494_v53 = vpop.f32.mrf.mxu1 }
 0x146   : > { %1629 = vst [vmem:[#allocation2 + $0x18] sm:$0xff] %v1525_v50   ;;  %1633 = vst [vmem:[#allocation2 + $0x38] sm:$0xff] %v1545_v51   ;;  %v1520_v54 = vpack.c.bf16 %v462_v52, %v459_v46  ;;  %v1540_v55 = vpack.c.bf16 %v494_v53, %v491_v47 }
 0x148   : > { %1628 = vst [vmem:[#allocation2 + $0x10] sm:$0xff] %v1520_v54   ;;  %1632 = vst [vmem:[#allocation2 + $0x30] sm:$0xff] %v1540_v55  }
 0x149 PF: > { %p1386_p12 = scmp.le.s32.totalorder %s2117_s18, 0 }
 0x14b   : > { %589 = sbr.rel (%p1386_p12) target bundleno = 580 (0x244), region = 60 }
 0x150   : > { %v1402_v56 = vcombine.low %v2319_v14, %v2321_v15  ;;  %v1401_v57 = vcombine.low %v2315_v12, %v2317_v13  ;;  %v1935_v58 = vld [vmem:[#allocation3] sm:$0xff]   ;;  %v1400_v60 = vcombine.low %v2311_v10, %v2313_v11  ;;  %v1399_v61 = vcombine.low %v2307_v8, %v2309_v9  ;;  %v1940_v9 = vld [vmem:[#allocation3 + $0x30] sm:$0xff]  }
 0x151   : > { %v1936_v59 = vld [vmem:[#allocation3 + $0x20] sm:$0xff]   ;;  %1744 = vmatprep.mubr.bf16.mxu0 %v1935_v58  ;;  %v1398_v62 = vcombine.low %v2303_v6, %v2305_v7  ;;  %v1397_v63 = vcombine.low %v2299_v4, %v2301_v5  ;;  %v1396_v8 = vcombine.low %v2295_v2, %v2297_v3  ;;  %v1395_v6 = vcombine.low %v2291_v0, %v2293_v1  ;;  %v1937_v7 = vld [vmem:[#allocation3 + $0x8] sm:$0xff]   ;;  %v1939_v5 = vld [vmem:[#allocation3 + $0x10] sm:$0xff]  }
 0x152   : > { %1728 = vmatprep.subr.bf16.mxu0 %v1402_v56  ;;  %1808 = vmatprep.subr.bf16.mxu1 %v1402_v56  ;;  %v1938_v4 = vld [vmem:[#allocation3 + $0x28] sm:$0xff]   ;;  %v1941_v2 = vld [vmem:[#allocation3 + $0x18] sm:$0xff]  }
 0x153   : > { %1729 = vmatpush3.bf16.msra.mxu0 %v1402_v56  ;;  %1816 = vmatpush3.bf16.msra.mxu1 %v1402_v56  ;;  %v1942_v3 = vld [vmem:[#allocation3 + $0x38] sm:$0xff]  }
 0x154   : > { %1730 = vmatprep.subr.bf16.mxu0 %v1401_v57  ;;  %1809 = vmatprep.subr.bf16.mxu1 %v1401_v57 }
 0x155   : > { %1752 = vmatprep.mubr.bf16.mxu1 %v1936_v59 }
 0x157   : > { %1731 = vmatpush3.bf16.msra.mxu0 %v1401_v57  ;;  %1817 = vmatpush3.bf16.msra.mxu1 %v1401_v57 }
 0x158   : > { %1732 = vmatprep.subr.bf16.mxu0 %v1400_v60  ;;  %1810 = vmatprep.subr.bf16.mxu1 %v1400_v60 }
 0x15b   : > { %1733 = vmatpush3.bf16.msra.mxu0 %v1400_v60  ;;  %1818 = vmatpush3.bf16.msra.mxu1 %v1400_v60 }
 0x15c   : > { %1734 = vmatprep.subr.bf16.mxu0 %v1399_v61  ;;  %1811 = vmatprep.subr.bf16.mxu1 %v1399_v61 }
 0x15f   : > { %1735 = vmatpush3.bf16.msra.mxu0 %v1399_v61  ;;  %1819 = vmatpush3.bf16.msra.mxu1 %v1399_v61 }
 0x160   : > { %1736 = vmatprep.subr.bf16.mxu0 %v1398_v62  ;;  %1812 = vmatprep.subr.bf16.mxu1 %v1398_v62 }
 0x163   : > { %1737 = vmatpush3.bf16.msra.mxu0 %v1398_v62  ;;  %1820 = vmatpush3.bf16.msra.mxu1 %v1398_v62 }
 0x164   : > { %1738 = vmatprep.subr.bf16.mxu0 %v1397_v63  ;;  %1813 = vmatprep.subr.bf16.mxu1 %v1397_v63 }
 0x167   : > { %1739 = vmatpush3.bf16.msra.mxu0 %v1397_v63  ;;  %1821 = vmatpush3.bf16.msra.mxu1 %v1397_v63 }
 0x168   : > { %1740 = vmatprep.subr.bf16.mxu0 %v1396_v8  ;;  %1814 = vmatprep.subr.bf16.mxu1 %v1396_v8 }
 0x16b   : > { %1741 = vmatpush3.bf16.msra.mxu0 %v1396_v8  ;;  %1822 = vmatpush3.bf16.msra.mxu1 %v1396_v8 }
 0x16c   : > { %1742 = vmatprep.subr.bf16.mxu0 %v1395_v6  ;;  %1815 = vmatprep.subr.bf16.mxu1 %v1395_v6 }
 0x16f   : > { %1743 = vmatpush3.bf16.msra.mxu0 %v1395_v6  ;;  %1823 = vmatpush3.bf16.msra.mxu1 %v1395_v6 }
 0x172   : > { %1745 = vmatmul.mubr.bf16.vlgmr.msra.gmra.mxu0 %v1937_v7  ;;  %1753 = vmatmul.mubr.bf16.vlgmr.msra.gmra.mxu1 %v1938_v4 }
 0x173   : > { %1748 = vmatprep.mubr.bf16.mxu0 %v1939_v5  ;;  %1756 = vmatprep.mubr.bf16.mxu1 %v1940_v9 }
 0x17a   : > { %1749 = vmatmul.mubr.bf16.gmra.mxu0 %v1941_v2  ;;  %1757 = vmatmul.mubr.bf16.gmra.mxu1 %v1942_v3 }
 0x232   : > { %v1746_v10 = vpop.f32.mrf.mxu0  ;;  %v1754_v0 = vpop.f32.mrf.mxu1 }
 0x234   : > { %v736_v1 = vpop.f32.mrf.mxu0  ;;  %v768_v11 = vpop.f32.mrf.mxu1 }
 0x236   : > { %v1747_v12 = vpop.f32.mrf.mxu0  ;;  %v1755_v13 = vpop.f32.mrf.mxu1 }
 0x237   : > { %v1555_v14 = vpack.c.bf16 %v1747_v12, %v1746_v10  ;;  %v1575_v15 = vpack.c.bf16 %v1755_v13, %v1754_v0 }
 0x238   : > { %v739_v16 = vpop.f32.mrf.mxu0  ;;  %v771_v17 = vpop.f32.mrf.mxu1 }
 0x239   : > { %1634 = vst [vmem:[#allocation2 + $0x8] sm:$0xff] %v1555_v14   ;;  %1638 = vst [vmem:[#allocation2 + $0x28] sm:$0xff] %v1575_v15   ;;  %v1550_v18 = vpack.c.bf16 %v739_v16, %v736_v1  ;;  %v1570_v19 = vpack.c.bf16 %v771_v17, %v768_v11 }
 0x23a   : > { %v1750_v20 = vpop.f32.mrf.mxu0  ;;  %v1758_v21 = vpop.f32.mrf.mxu1 }
 0x23b   : > { %1551 = vst [vmem:[#allocation2] sm:$0xff] %v1550_v18   ;;  %1637 = vst [vmem:[#allocation2 + $0x20] sm:$0xff] %v1570_v19  }
 0x23c   : > { %v752_v22 = vpop.f32.mrf.mxu0  ;;  %v784_v23 = vpop.f32.mrf.mxu1 }
 0x23e   : > { %v1751_v24 = vpop.f32.mrf.mxu0  ;;  %v1759_v25 = vpop.f32.mrf.mxu1 }
 0x23f   : > { %v1565_v26 = vpack.c.bf16 %v1751_v24, %v1750_v20  ;;  %v1585_v27 = vpack.c.bf16 %v1759_v25, %v1758_v21 }
 0x240   : > { %v755_v28 = vpop.f32.mrf.mxu0  ;;  %v787_v29 = vpop.f32.mrf.mxu1 }
 0x241   : > { %1636 = vst [vmem:[#allocation2 + $0x18] sm:$0xff] %v1565_v26   ;;  %1640 = vst [vmem:[#allocation2 + $0x38] sm:$0xff] %v1585_v27   ;;  %v1560_v30 = vpack.c.bf16 %v755_v28, %v752_v22  ;;  %v1580_v31 = vpack.c.bf16 %v787_v29, %v784_v23 }
 0x243   : > { %1635 = vst [vmem:[#allocation2 + $0x10] sm:$0xff] %v1560_v30   ;;  %1639 = vst [vmem:[#allocation2 + $0x30] sm:$0xff] %v1580_v31  }
 0x244 PF: > { %v1945_v34 = vld [vmem:[#allocation2 + $0x28] sm:$0xff]   ;;  %v1946_v35 = vld [vmem:[#allocation2 + $0x20] sm:$0xff]   ;;  %v1955_v44 = vld [vmem:[#allocation4 + $0x10] sm:$0xff]   ;;  %p1436_p9 = scmp.ge.s32.totalorder %s2117_s18, 2 }
 0x245   : > { %v1951_v36 = vld [vmem:[#allocation4] sm:$0xff]   ;;  %v1949_v40 = vld [vmem:[#allocation2 + $0x8] sm:$0xff]   ;;  %v1956_v45 = vld [vmem:[#allocation4 + $0x30] sm:$0xff]  }
 0x246   : > { %v1952_v37 = vld [vmem:[#allocation4 + $0x20] sm:$0xff]   ;;  %1776 = vmatprep.mubr.bf16.mxu0 %v1951_v36  ;;  %v1953_v42 = vld [vmem:[#allocation4 + $0x8] sm:$0xff]   ;;  %v1957_v46 = vld [vmem:[#allocation4 + $0x18] sm:$0xff]  }
 0x247   : > { %1784 = vmatprep.mubr.bf16.mxu1 %v1952_v37  ;;  %v1950_v41 = vld [vmem:[#allocation2] sm:$0xff]   ;;  %v1954_v43 = vld [vmem:[#allocation4 + $0x28] sm:$0xff]   ;;  %v1958_v47 = vld [vmem:[#allocation4 + $0x38] sm:$0xff]  }
 0x248   : > { %v1943_v32 = vld [vmem:[#allocation2 + $0x38] sm:$0xff]   ;;  %v1419_v48 = vld [vmem:[%s270_s5] ss:$0 sm:$0xff] }
 0x249   : > { %1760 = vmatprep.subr.bf16.mxu0 %v1943_v32  ;;  %1824 = vmatprep.subr.bf16.mxu1 %v1943_v32  ;;  %v1947_v38 = vld [vmem:[#allocation2 + $0x18] sm:$0xff]  }
 0x24a   : > { %v1944_v33 = vld [vmem:[#allocation2 + $0x30] sm:$0xff]   ;;  %1761 = vmatpush3.bf16.msra.mxu0 %v1943_v32  ;;  %1832 = vmatpush3.bf16.msra.mxu1 %v1943_v32 }
 0x24b   : > { %1762 = vmatprep.subr.bf16.mxu0 %v1944_v33  ;;  %1825 = vmatprep.subr.bf16.mxu1 %v1944_v33  ;;  %v1948_v39 = vld [vmem:[#allocation2 + $0x10] sm:$0xff]  }
 0x24e   : > { %1763 = vmatpush3.bf16.msra.mxu0 %v1944_v33  ;;  %1833 = vmatpush3.bf16.msra.mxu1 %v1944_v33 }
 0x24f   : > { %1764 = vmatprep.subr.bf16.mxu0 %v1945_v34  ;;  %1826 = vmatprep.subr.bf16.mxu1 %v1945_v34 }
 0x252   : > { %1765 = vmatpush3.bf16.msra.mxu0 %v1945_v34  ;;  %1834 = vmatpush3.bf16.msra.mxu1 %v1945_v34 }
 0x253   : > { %1766 = vmatprep.subr.bf16.mxu0 %v1946_v35  ;;  %1827 = vmatprep.subr.bf16.mxu1 %v1946_v35 }
 0x256   : > { %1767 = vmatpush3.bf16.msra.mxu0 %v1946_v35  ;;  %1835 = vmatpush3.bf16.msra.mxu1 %v1946_v35 }
 0x257   : > { %1768 = vmatprep.subr.bf16.mxu0 %v1947_v38  ;;  %1828 = vmatprep.subr.bf16.mxu1 %v1947_v38 }
 0x25a   : > { %1769 = vmatpush3.bf16.msra.mxu0 %v1947_v38  ;;  %1836 = vmatpush3.bf16.msra.mxu1 %v1947_v38 }
 0x25b   : > { %1770 = vmatprep.subr.bf16.mxu0 %v1948_v39  ;;  %1829 = vmatprep.subr.bf16.mxu1 %v1948_v39 }
 0x25e   : > { %1771 = vmatpush3.bf16.msra.mxu0 %v1948_v39  ;;  %1837 = vmatpush3.bf16.msra.mxu1 %v1948_v39 }
 0x25f   : > { %1772 = vmatprep.subr.bf16.mxu0 %v1949_v40  ;;  %1830 = vmatprep.subr.bf16.mxu1 %v1949_v40 }
 0x262   : > { %1773 = vmatpush3.bf16.msra.mxu0 %v1949_v40  ;;  %1838 = vmatpush3.bf16.msra.mxu1 %v1949_v40 }
 0x263   : > { %1774 = vmatprep.subr.bf16.mxu0 %v1950_v41  ;;  %1831 = vmatprep.subr.bf16.mxu1 %v1950_v41 }
 0x266   : > { %1775 = vmatpush3.bf16.msra.mxu0 %v1950_v41  ;;  %1839 = vmatpush3.bf16.msra.mxu1 %v1950_v41 }
 0x269   : > { %1777 = vmatmul.mubr.bf16.vlgmr.msra.gmra.mxu0 %v1953_v42  ;;  %1785 = vmatmul.mubr.bf16.vlgmr.msra.gmra.mxu1 %v1954_v43 }
 0x26a   : > { %1780 = vmatprep.mubr.bf16.mxu0 %v1955_v44  ;;  %1788 = vmatprep.mubr.bf16.mxu1 %v1956_v45 }
 0x271   : > { %1781 = vmatmul.mubr.bf16.gmra.mxu0 %v1957_v46  ;;  %1789 = vmatmul.mubr.bf16.gmra.mxu1 %v1958_v47 }
 0x329   : > { %v1778_v49 = vpop.f32.mrf.mxu0  ;;  %v1786_v50 = vpop.f32.mrf.mxu1 }
 0x32a   : > { %v2362_v51 = vadd.f32 %v1778_v49, %v1419_v48  ;;  %v2364_v52 = vadd.f32 %v1786_v50, %v1419_v48 }
 0x32b   : > { %v1048_v53 = vpop.f32.mrf.mxu0  ;;  %v1080_v54 = vpop.f32.mrf.mxu1 }
 0x32c   : > { %v1049_v55 = vadd.f32 %v1419_v48, %v1048_v53  ;;  %v2366_v56 = vadd.f32 %v1419_v48, %v1080_v54 }
 0x32d   : > { %v1779_v57 = vpop.f32.mrf.mxu0  ;;  %v1787_v58 = vpop.f32.mrf.mxu1 }
 0x32e   : > { %v1060_v59 = vadd.f32 %v1779_v57, %v1419_v48  ;;  %v2368_v60 = vadd.f32 %v1787_v58, %v1419_v48 }
 0x32f   : > { %v1051_v61 = vpop.f32.mrf.mxu0  ;;  %v1083_v62 = vpop.f32.mrf.mxu1 }
 0x330   : > { %v1052_v63 = vadd.f32 %v1419_v48, %v1051_v61  ;;  %v1084_v8 = vadd.f32 %v1419_v48, %v1083_v62 }
 0x331   : > { %v1782_v6 = vpop.f32.mrf.mxu0  ;;  %v1790_v7 = vpop.f32.mrf.mxu1 }
 0x332   : > { %v1073_v4 = vadd.f32 %v1782_v6, %v1419_v48  ;;  %v2370_v5 = vadd.f32 %v1790_v7, %v1419_v48 }
 0x333   : > { %v1064_v9 = vpop.f32.mrf.mxu0  ;;  %v1096_v2 = vpop.f32.mrf.mxu1 }
 0x334   : > { %v1065_v3 = vadd.f32 %v1419_v48, %v1064_v9  ;;  %v1097_v10 = vadd.f32 %v1419_v48, %v1096_v2  ;;  %1114 = sbr.rel (%p1436_p9) target bundleno = 835 (0x343), region = 64 }
 0x335   : > { %v1783_v0 = vpop.f32.mrf.mxu0  ;;  %v1791_v1 = vpop.f32.mrf.mxu1 }
 0x336   : > { %v1076_v11 = vadd.f32 %v1783_v0, %v1419_v48  ;;  %v1108_v12 = vadd.f32 %v1791_v1, %v1419_v48 }
 0x337   : > { %v1067_v13 = vpop.f32.mrf.mxu0  ;;  %v1099_v14 = vpop.f32.mrf.mxu1 }
 0x338   : > { %v1068_v15 = vadd.f32 %v1419_v48, %v1067_v13  ;;  %v1100_v16 = vadd.f32 %v1419_v48, %v1099_v14 }
 0x339   : > { %v1116_v17 = vmax.f32 %v1049_v55, 0.0  ;;  %v1117_v18 = vmax.f32 %v1052_v63, 0.0  ;;  %v1118_v19 = vmax.f32 %v2362_v51, 0.0  ;;  %v1119_v20 = vmax.f32 %v1060_v59, 0.0 }
 0x33a   : > { %v1120_v21 = vmax.f32 %v1065_v3, 0.0  ;;  %v1121_v22 = vmax.f32 %v1068_v15, 0.0  ;;  %v1122_v23 = vmax.f32 %v1073_v4, 0.0  ;;  %v1123_v24 = vmax.f32 %v1076_v11, 0.0 }
 0x33b   : > { %v1590_v25 = vpack.c.bf16 %v1117_v18, %v1116_v17  ;;  %v1595_v26 = vpack.c.bf16 %v1119_v20, %v1118_v19  ;;  %v1124_v27 = vmax.f32 %v2366_v56, 0.0  ;;  %v1125_v28 = vmax.f32 %v1084_v8, 0.0 }
 0x33c   : > { %v1600_v29 = vpack.c.bf16 %v1121_v22, %v1120_v21  ;;  %v1605_v30 = vpack.c.bf16 %v1123_v24, %v1122_v23  ;;  %v1126_v31 = vmax.f32 %v2364_v52, 0.0  ;;  %v1127_v32 = vmax.f32 %v2368_v60, 0.0 }
 0x33d   : > { %1591 = vst [vmem:[#allocation3] sm:$0xff] %v1590_v25   ;;  %1641 = vst [vmem:[#allocation3 + $0x8] sm:$0xff] %v1595_v26   ;;  %v1610_v33 = vpack.c.bf16 %v1125_v28, %v1124_v27  ;;  %v1128_v34 = vmax.f32 %v1097_v10, 0.0  ;;  %v1129_v35 = vmax.f32 %v1100_v16, 0.0  ;;  %v1130_v36 = vmax.f32 %v2370_v5, 0.0 }
 0x33e   : > { %1642 = vst [vmem:[#allocation3 + $0x10] sm:$0xff] %v1600_v29   ;;  %1643 = vst [vmem:[#allocation3 + $0x18] sm:$0xff] %v1605_v30   ;;  %v1615_v37 = vpack.c.bf16 %v1127_v32, %v1126_v31  ;;  %v1131_v38 = vmax.f32 %v1108_v12, 0.0 }
 0x33f   : > { %1644 = vst [vmem:[#allocation3 + $0x20] sm:$0xff] %v1610_v33   ;;  %v1620_v39 = vpack.c.bf16 %v1129_v35, %v1128_v34 }
 0x340   : > { %1645 = vst [vmem:[#allocation3 + $0x28] sm:$0xff] %v1615_v37   ;;  %v1625_v40 = vpack.c.bf16 %v1131_v38, %v1130_v36 }
 0x341   : > { %1646 = vst [vmem:[#allocation3 + $0x30] sm:$0xff] %v1620_v39  }
 0x342   : > { %1647 = vst [vmem:[#allocation3 + $0x38] sm:$0xff] %v1625_v40  }
 0x343 PF: > { %p1453_p5 = scmp.ne.s32.totalorder %s2117_s18, 2 }
 0x345   : > { %1219 = sbr.rel (%p1453_p5) target bundleno = 850 (0x352), region = 68 }
 0x34a   : > { %1220 = vst [vmem:[#allocation10] sm:$0xff] %v1049_v55  ;;  %1221 = vst [vmem:[#allocation10 + $0x8] sm:$0xff] %v1052_v63 }
 0x34b   : > { %1222 = vst [vmem:[#allocation10 + $0x10] sm:$0xff] %v2362_v51  ;;  %1223 = vst [vmem:[#allocation10 + $0x18] sm:$0xff] %v1060_v59 }
 0x34c   : > { %1224 = vst [vmem:[#allocation10 + $0x20] sm:$0xff] %v1065_v3  ;;  %1225 = vst [vmem:[#allocation10 + $0x28] sm:$0xff] %v1068_v15 }
 0x34d   : > { %1226 = vst [vmem:[#allocation10 + $0x30] sm:$0xff] %v1073_v4  ;;  %1227 = vst [vmem:[#allocation10 + $0x38] sm:$0xff] %v1076_v11 }
 0x34e   : > { %1228 = vst [vmem:[#allocation10 + $0x40] sm:$0xff] %v2366_v56  ;;  %1229 = vst [vmem:[#allocation10 + $0x48] sm:$0xff] %v1084_v8 }
 0x34f   : > { %1230 = vst [vmem:[#allocation10 + $0x50] sm:$0xff] %v2364_v52  ;;  %1231 = vst [vmem:[#allocation10 + $0x58] sm:$0xff] %v2368_v60 }
 0x350   : > { %1232 = vst [vmem:[#allocation10 + $0x60] sm:$0xff] %v1097_v10  ;;  %1233 = vst [vmem:[#allocation10 + $0x68] sm:$0xff] %v1100_v16 }
 0x351   : > { %1234 = vst [vmem:[#allocation10 + $0x70] sm:$0xff] %v2370_v5  ;;  %1235 = vst [vmem:[#allocation10 + $0x78] sm:$0xff] %v1108_v12 }
 0x352 PF: > { %p1870_p3 = scmp.eq.s32.totalorder %s2189_s21, 2  ;;  %s2132_s18 = smov [#allocation10]  }
 0x353   : > { %s1245_s7 = sshll.u32 %s2132_s18, 4  ;;  %s1246_s7 = int_to_ptr.vmem [resolvable:$true] %s1245_s7 }
 0x354   : > { %s2039_s9 = scalar_lea.vmem %s1246_s7, 2048  ;;  %p2046_p2 = scmp.lt.s32.totalorder %s1246_s7, %s1246_s7 }
 0x355   : > { %p2040_p11 = scmp.ne.s32.totalorder %s1246_s7, %s2039_s9  ;;  %p2047_p4 = scmp.lt.s32.totalorder %s2039_s9, %s2039_s9 }
 0x357   : > { %p2041_p0 = pnand %p2040_p11, %p1870_p3  ;;  %p2048_p13 = por %p2047_p4, %p2046_p2 }
 0x359   : > { %p2042_p1 = pneg %p2041_p0 }
 0x35b   : > { %p2049_p6 = pnand %p2048_p13, %p2042_p1 }
 0x35d   : > { %2052 = shalt.err (!%p2049_p6)
}
 0x35e   : > { %s2133_s10 = smov 128   ;;  %s2134_s11 = smov 8  }
 0x35f   : > { %1851 = dma.vmem_to_hbm [thread:$0]  (%p1870_p3), %s1246_s7, 2048, %s2418_s4, [#allocation6], %s2133_s10, %s2133_s10, %s2134_s11  }
 0x360   : > { %2100 = dma.done.wait (%p1870_p3), [#allocation6], 2048  }
 0x361   : > { %2102 = vsyncadd (%p1870_p3), [#allocation6], 4294965248 }
 0x362 PF: > { %s17_s20 = sadd.s32 1, %s2125_s20   ;;  %s2430_s15 = smov %s2109_s16 }
 0x363   : > { %p14_p10 = scmp.ge.s32.totalorder %s17_s20, 5   ;;  %s2431_s16 = smov %s2113_s17 }
 0x364   : > { %s2432_s17 = smov %s2258_s8  ;;  %s2433_s18 = smov %s2121_s19 }
 0x365   : > { %s2434_s19 = smov %s2436_s12  ;;  %16 = sbr.rel (!%p14_p10) target bundleno = 5 (0x5), region = 106 }
 0x36a   :  { %1261 = vsyncpa [#allocation5], 1 }
 0x36b   :  { %1263 = vsyncpa [#allocation5 + $0x1], 1 }
 0x36c   :  { %1264 = vsyncpa [#allocation8], 1 }
 0x36d   :  { %1265 = vsyncpa [#allocation6], 1 }
 0x36e   :  { %1267 = vsyncpa [#allocation6 + $0x1], 1 }

// kernel: tpu_custom_call.1
= control target key start
LH: loop header
LB: loop body
LE: loop exit
PB: predicated region body
PF: predicated region fallthrough
CT: control target
= control target key end

     0   :  { %9 = vsyncpa [#allocation5], 0  ;;  %s2414_s0 = inlined_call_operand.hbm [shape: bf16[128,128], index: 0, kind: input, shape index: {}]   ;;  %s2415_s1 = inlined_call_operand.hbm [shape: bf16[128,128], index: 1, kind: input, shape index: {}]   ;;  %s2416_s2 = inlined_call_operand.hbm [shape: bf16[3,128,128], index: 2, kind: input, shape index: {}]   ;;  %s2417_s3 = inlined_call_operand.vmem [shape: f32[3,1,128], index: 3, kind: input, shape index: {}]   ;;  %s2418_s4 = inlined_call_operand.hbm [shape: f32[128,128], index: 4, kind: output, shape index: {}]  }
   0x1   :  { %10 = vsyncpa [#allocation8], 0 }
   0x2   :  { %11 = vsyncpa [#allocation6], 0  ;;  %s2160_s15 = smov 0   ;;  %s2162_s16 = smov 0  }
   0x3   :  { %s2164_s17 = smov 0   ;;  %s2166_s18 = smov 0  }
   0x4   :  { %s2168_s19 = smov 0   ;;  %s2170_s20 = smov 0  }
   0x5 LB: > { %s2189_s21 = sadd.s32 4294967295, %s2125_s20   ;;  %p90_p0 = scmp.ne.s32.totalorder %s2113_s17, %s2109_s16  ;;  %s2125_s20 = sphi %s2170_s20, %s17_s20   ;;  %s2121_s19 = sphi %s2168_s19, %s2434_s19   ;;  %s2117_s18 = sphi %s2166_s18, %s2433_s18   ;;  %s2113_s17 = sphi %s2164_s17, %s2432_s17   ;;  %s2109_s16 = sphi %s2162_s16, %s2431_s16   ;;  %s2105_s15 = sphi %s2160_s15, %s2430_s15  }
   0x6   : > { %p91_p1 = scmp.eq.s32.totalorder %s2125_s20, 0  ;;  %p96_p2 = scmp.ne.s32.totalorder %s2109_s16, %s2105_s15 }
   0x7   : > { %p2419_p3 = scmp.eq.s32.totalorder %s2189_s21, 0  ;;  %p1342_p4 = scmp.ge.s32.totalorder %s2125_s20, 1 }
   0x8   : > { %p92_p5 = por %p91_p1, %p90_p0  ;;  %p159_p6 = scmp.lt.s32.totalorder %s2125_s20, 4 }
   0x9   : > { %p2200_p7 = por %p2419_p3, %p96_p2  ;;  %s2127_s24 = smov [#allocation4]  }
   0xa   : > { %p2204_p8 = pnand %p1342_p4, %p159_p6  ;;  %s174_s25 = sshll.u32 %s2127_s24, 4  ;;  %s175_s25 = int_to_ptr.vmem [resolvable:$true] %s174_s25 }
   0xb   : > { %p1867_p11 = scmp.lt.s32.totalorder %s2125_s20, 3  ;;  %s1970_s28 = scalar_lea.vmem %s175_s25, 1024 }
   0xc   : > { %p1854_p9 = pneg %p2204_p8  ;;  %p1971_p0 = scmp.ne.s32.totalorder %s175_s25, %s1970_s28 }
   0xd   : > { %p2217_p12 = pnand %p1867_p11, %p92_p5  ;;  %p1978_p4 = scmp.lt.s32.totalorder %s175_s25, %s175_s25 }
   0xe   : > { %p2212_p10 = pnand %p1854_p9, %p2419_p3  ;;  %p1979_p6 = scmp.lt.s32.totalorder %s1970_s28, %s1970_s28 }
  0x10   : > { %p1961_p13 = pneg %p2212_p10  ;;  %p1980_p9 = por %p1979_p6, %p1978_p4 }
  0x12   : > { %p1973_p1 = pnand %p1971_p0, %p1961_p13 }
  0x14   : > { %p1974_p2 = pneg %p1973_p1 }
  0x16   : > { %p1981_p3 = pnand %p1980_p9, %p1974_p2 }
  0x18   : > { %1984 = shalt.err (!%p1981_p3)
}
  0x19   : > { %s2420_s29 = smov 64   ;;  %s2129_s30 = smov 4  }
  0x1a   : > { %1857 = dma.hbm_to_vmem [thread:$0]  (!%p2212_p10), %s2414_s0, 1024, %s175_s25, [#allocation5], %s2420_s29, %s2420_s29, %s2129_s30  }
  0x1b   : > { %s2130_s7 = smov [#allocation7]  }
  0x1c   : > { %s187_s8 = sshll.u32 %s2130_s7, 4  ;;  %s188_s8 = int_to_ptr.vmem [resolvable:$true] %s187_s8 }
  0x1d   : > { %s1996_s9 = scalar_lea.vmem %s188_s8, 1024  ;;  %p2004_p0 = scmp.lt.s32.totalorder %s188_s8, %s188_s8 }
  0x1e   : > { %p1997_p5 = scmp.ne.s32.totalorder %s188_s8, %s1996_s9  ;;  %p2005_p1 = scmp.lt.s32.totalorder %s1996_s9, %s1996_s9 }
  0x20   : > { %p1999_p3 = pnand %p1997_p5, %p1961_p13  ;;  %p2006_p2 = por %p2005_p1, %p2004_p0 }
  0x22   : > { %p2000_p11 = pneg %p1999_p3 }
  0x24   : > { %p2007_p4 = pnand %p2006_p2, %p2000_p11 }
  0x26   : > { %2010 = shalt.err (!%p2007_p4)
}
  0x27   : > { %1860 = dma.hbm_to_vmem [thread:$0]  (!%p2212_p10), %s2415_s1, 1024, %s188_s8, [#allocation8], %s2420_s29, %s2420_s29, %s2129_s30  }
  0x28   : > { %s29_s12 = sadd.s32 1, %s2121_s19  ;;  %s83_s13 = sadd.s32 1, %s2113_s17 }
  0x29   : > { %p31_p13 = scmp.ge.s32.totalorder %s29_s12, 3  ;;  %s201_s14 = sand.u32 1, %s2125_s20  }
  0x2a   : > { %s203_s15 = sand.u32 1, %s2113_s17   ;;  %s1458_s25 = sshll.u32 %s2121_s19, 10 }
  0x2b   : > { %s2436_s12 = smov (%p31_p13, %s29_s12), 0  ;;  %s1346_s24 = sshll.u32 %s203_s15, 6 }
  0x2c   : > { %s80_s26 = ssub.s32 %s2121_s19, %s2436_s12  ;;  %s211_s6 = scalar_lea.hbm %s2416_s2, %s1458_s25 }
  0x2d   : > { %p81_p6 = scmp.eq.s32.totalorder %s80_s26, 0  ;;  %s205_s7 = scalar_lea.vmem [#allocation9], %s1346_s24 }
  0x2e   : > { %s212_s9 = sshll.u32 %s205_s7, 4  ;;  %s202_s10 = scalar_lea.sflag [#allocation5], %s201_s14  ;;  %s213_s9 = int_to_ptr.vmem [resolvable:$true] %s212_s9 }
  0x2f   : > { %s2258_s8 = scalar_select %p81_p6, %s2113_s17, %s83_s13  }
  0x30   : > { %p2013_p10 = pneg %p2217_p12  ;;  %s2024_s11 = scalar_lea.vmem %s213_s9, 1024 }
  0x31   : > { %p2025_p9 = scmp.ne.s32.totalorder %s213_s9, %s2024_s11  ;;  %s2131_s15 = smov [#allocation9]  }
  0x32   : > { %s2029_s29 = sshll.u32 %s2131_s15, 4  ;;  %s2030_s29 = int_to_ptr.vmem [resolvable:$false] %s2029_s29 }
  0x33   : > { %p2027_p5 = pnand %p2025_p9, %p2013_p10  ;;  %s2031_s26 = scalar_lea.vmem %s2030_s29, 2048 }
  0x34   : > { %p2032_p11 = scmp.lt.s32.totalorder %s213_s9, %s2030_s29  ;;  %p2033_p0 = scmp.lt.s32.totalorder %s2031_s26, %s2024_s11 }
  0x35   : > { %p2028_p3 = pneg %p2027_p5 }
  0x36   : > { %p2034_p1 = por %p2033_p0, %p2032_p11 }
  0x38   : > { %p2035_p2 = pnand %p2034_p1, %p2028_p3 }
  0x3a   : > { %2038 = shalt.err (!%p2035_p2)
}
  0x3b   : > { %s2425_s13 = smov 64   ;;  %230 = sbr.rel (%p2204_p8) target bundleno = 866 (0x362), region = 36 }
  0x3c   : > { %1864 = dma.hbm_to_vmem [thread:$0]  (!%p2217_p12), %s211_s6, 1024, %s213_s9, %s202_s10, %s2425_s13, %s2425_s13, %s2129_s30  }
  0x3d   : > { %p2426_p4 = scmp.eq.s32.totalorder (!%p2204_p8), %s2189_s21, 0 }
  0x40   : > { %2088 = dma.done.wait (%p2426_p4), [#allocation5], 1024   ;;  %p2427_p13 = pmov %p2426_p4 }
  0x41   : > { %p2428_p6 = pmov %p2426_p4 }
  0x42   : > { %2090 = vsyncadd (%p2427_p13), [#allocation5], 4294966272 }
  0x43   : > { %2092 = dma.done.wait (%p2428_p6), [#allocation8], 1024   ;;  %p2429_p10 = pmov %p2426_p4 }
  0x44   : > { %s240_s27 = sand.u32 1, %s2189_s21   ;;  %s242_s29 = sand.u32 1, %s2109_s16  }
  0x45   : > { %2094 = vsyncadd (%p2429_p10), [#allocation8], 4294966272  ;;  %s1352_s30 = sshll.u32 %s242_s29, 6  ;;  %s241_s23 = scalar_lea.sflag [#allocation5], %s240_s27 }
  0x46   : > { %s244_s14 = scalar_lea.vmem [#allocation9], %s1352_s30 }
  0x47   : > { %2096 = dma.done.wait (%p2200_p7), %s241_s23, 1024  }
  0x48   : > { %2098 = vsyncadd (%p2200_p7), %s241_s23, 4294966272  ;;  %p268_p8 = scmp.lt.s32.totalorder %s2117_s18, 2  ;;  %v2291_v0 = vld [vmem:[%s244_s14] sm:$0xf]  ;;  %v2293_v1 = vld [vmem:[%s244_s14 + $0x4] sm:$0xf] }
  0x49   : > { %v2295_v2 = vld [vmem:[%s244_s14 + $0x8] sm:$0xf]  ;;  %v2297_v3 = vld [vmem:[%s244_s14 + $0xc] sm:$0xf]  ;;  %v2299_v4 = vld [vmem:[%s244_s14 + $0x10] sm:$0xf] }
  0x4a   : > { %s2285_s24 = scalar_select %p268_p8, %s2117_s18, 2  ;;  %v2301_v5 = vld [vmem:[%s244_s14 + $0x14] sm:$0xf]  ;;  %v2303_v6 = vld [vmem:[%s244_s14 + $0x18] sm:$0xf] }
  0x4b   : > { %v2305_v7 = vld [vmem:[%s244_s14 + $0x1c] sm:$0xf]  ;;  %v2307_v8 = vld [vmem:[%s244_s14 + $0x20] sm:$0xf]  ;;  %v2309_v9 = vld [vmem:[%s244_s14 + $0x24] sm:$0xf] }
  0x4c   : > { %s270_s5 = scalar_lea.vmem %s2417_s3, %s2285_s24  ;;  %v2311_v10 = vld [vmem:[%s244_s14 + $0x28] sm:$0xf]  ;;  %v2313_v11 = vld [vmem:[%s244_s14 + $0x2c] sm:$0xf]  ;;  %v2315_v12 = vld [vmem:[%s244_s14 + $0x30] sm:$0xf] }
  0x4d   : > { %v2317_v13 = vld [vmem:[%s244_s14 + $0x34] sm:$0xf]  ;;  %v2319_v14 = vld [vmem:[%s244_s14 + $0x38] sm:$0xf]  ;;  %v2321_v15 = vld [vmem:[%s244_s14 + $0x3c] sm:$0xf] }
  0x4e   : > { %p1353_p7 = scmp.ne.s32.totalorder %s2117_s18, 0 }
  0x50   : > { %296 = sbr.rel (%p1353_p7) target bundleno = 329 (0x149), region = 56 }
  0x55   : > { %v1369_v16 = vcombine.low %v2319_v14, %v2321_v15  ;;  %v1368_v17 = vcombine.low %v2315_v12, %v2317_v13  ;;  %v1927_v18 = vld [vmem:[#allocation7] sm:$0xff]   ;;  %v1367_v20 = vcombine.low %v2311_v10, %v2313_v11  ;;  %v1366_v21 = vcombine.low %v2307_v8, %v2309_v9  ;;  %v1929_v26 = vld [vmem:[#allocation7 + $0x8] sm:$0xff]   ;;  %v1931_v28 = vld [vmem:[#allocation7 + $0x10] sm:$0xff]  }
  0x56   : > { %v1928_v19 = vld [vmem:[#allocation7 + $0x20] sm:$0xff]   ;;  %1712 = vmatprep.mubr.bf16.mxu0 %v1927_v18  ;;  %v1365_v22 = vcombine.low %v2303_v6, %v2305_v7  ;;  %v1364_v23 = vcombine.low %v2299_v4, %v2301_v5  ;;  %v1363_v24 = vcombine.low %v2295_v2, %v2297_v3  ;;  %v1362_v25 = vcombine.low %v2291_v0, %v2293_v1  ;;  %v1930_v27 = vld [vmem:[#allocation7 + $0x28] sm:$0xff]   ;;  %v1932_v29 = vld [vmem:[#allocation7 + $0x30] sm:$0xff]  }
  0x57   : > { %1696 = vmatprep.subr.bf16.mxu0 %v1369_v16  ;;  %1792 = vmatprep.subr.bf16.mxu1 %v1369_v16  ;;  %v1933_v30 = vld [vmem:[#allocation7 + $0x18] sm:$0xff]  }
  0x58   : > { %1697 = vmatpush3.bf16.msra.mxu0 %v1369_v16  ;;  %1800 = vmatpush3.bf16.msra.mxu1 %v1369_v16  ;;  %v1934_v31 = vld [vmem:[#allocation7 + $0x38] sm:$0xff]  }
  0x59   : > { %1698 = vmatprep.subr.bf16.mxu0 %v1368_v17  ;;  %1793 = vmatprep.subr.bf16.mxu1 %v1368_v17 }
  0x5a   : > { %1720 = vmatprep.mubr.bf16.mxu1 %v1928_v19 }
  0x5c   : > { %1699 = vmatpush3.bf16.msra.mxu0 %v1368_v17  ;;  %1801 = vmatpush3.bf16.msra.mxu1 %v1368_v17 }
  0x5d   : > { %1700 = vmatprep.subr.bf16.mxu0 %v1367_v20  ;;  %1794 = vmatprep.subr.bf16.mxu1 %v1367_v20 }
  0x60   : > { %1701 = vmatpush3.bf16.msra.mxu0 %v1367_v20  ;;  %1802 = vmatpush3.bf16.msra.mxu1 %v1367_v20 }
  0x61   : > { %1702 = vmatprep.subr.bf16.mxu0 %v1366_v21  ;;  %1795 = vmatprep.subr.bf16.mxu1 %v1366_v21 }
  0x64   : > { %1703 = vmatpush3.bf16.msra.mxu0 %v1366_v21  ;;  %1803 = vmatpush3.bf16.msra.mxu1 %v1366_v21 }
  0x65   : > { %1704 = vmatprep.subr.bf16.mxu0 %v1365_v22  ;;  %1796 = vmatprep.subr.bf16.mxu1 %v1365_v22 }
  0x68   : > { %1705 = vmatpush3.bf16.msra.mxu0 %v1365_v22  ;;  %1804 = vmatpush3.bf16.msra.mxu1 %v1365_v22 }
  0x69   : > { %1706 = vmatprep.subr.bf16.mxu0 %v1364_v23  ;;  %1797 = vmatprep.subr.bf16.mxu1 %v1364_v23 }
  0x6c   : > { %1707 = vmatpush3.bf16.msra.mxu0 %v1364_v23  ;;  %1805 = vmatpush3.bf16.msra.mxu1 %v1364_v23 }
  0x6d   : > { %1708 = vmatprep.subr.bf16.mxu0 %v1363_v24  ;;  %1798 = vmatprep.subr.bf16.mxu1 %v1363_v24 }
  0x70   : > { %1709 = vmatpush3.bf16.msra.mxu0 %v1363_v24  ;;  %1806 = vmatpush3.bf16.msra.mxu1 %v1363_v24 }
  0x71   : > { %1710 = vmatprep.subr.bf16.mxu0 %v1362_v25  ;;  %1799 = vmatprep.subr.bf16.mxu1 %v1362_v25 }
  0x74   : > { %1711 = vmatpush3.bf16.msra.mxu0 %v1362_v25  ;;  %1807 = vmatpush3.bf16.msra.mxu1 %v1362_v25 }
  0x77   : > { %1713 = vmatmul.mubr.bf16.vlgmr.msra.gmra.mxu0 %v1929_v26  ;;  %1721 = vmatmul.mubr.bf16.vlgmr.msra.gmra.mxu1 %v1930_v27 }
  0x78   : > { %1716 = vmatprep.mubr.bf16.mxu0 %v1931_v28  ;;  %1724 = vmatprep.mubr.bf16.mxu1 %v1932_v29 }
  0x7f   : > { %1717 = vmatmul.mubr.bf16.gmra.mxu0 %v1933_v30  ;;  %1725 = vmatmul.mubr.bf16.gmra.mxu1 %v1934_v31 }
 0x137   : > { %v1714_v32 = vpop.f32.mrf.mxu0  ;;  %v1722_v33 = vpop.f32.mrf.mxu1 }
 0x139   : > { %v443_v34 = vpop.f32.mrf.mxu0  ;;  %v475_v35 = vpop.f32.mrf.mxu1 }
 0x13b   : > { %v1715_v36 = vpop.f32.mrf.mxu0  ;;  %v1723_v37 = vpop.f32.mrf.mxu1 }
 0x13c   : > { %v1515_v38 = vpack.c.bf16 %v1715_v36, %v1714_v32  ;;  %v1535_v39 = vpack.c.bf16 %v1723_v37, %v1722_v33 }
 0x13d   : > { %v446_v40 = vpop.f32.mrf.mxu0  ;;  %v478_v41 = vpop.f32.mrf.mxu1 }
 0x13e   : > { %1627 = vst [vmem:[#allocation2 + $0x8] sm:$0xff] %v1515_v38   ;;  %1631 = vst [vmem:[#allocation2 + $0x28] sm:$0xff] %v1535_v39   ;;  %v1510_v42 = vpack.c.bf16 %v446_v40, %v443_v34  ;;  %v1530_v43 = vpack.c.bf16 %v478_v41, %v475_v35 }
 0x13f   : > { %v1718_v44 = vpop.f32.mrf.mxu0  ;;  %v1726_v45 = vpop.f32.mrf.mxu1 }
 0x140   : > { %1511 = vst [vmem:[#allocation2] sm:$0xff] %v1510_v42   ;;  %1630 = vst [vmem:[#allocation2 + $0x20] sm:$0xff] %v1530_v43  }
 0x141   : > { %v459_v46 = vpop.f32.mrf.mxu0  ;;  %v491_v47 = vpop.f32.mrf.mxu1 }
 0x143   : > { %v1719_v48 = vpop.f32.mrf.mxu0  ;;  %v1727_v49 = vpop.f32.mrf.mxu1 }
 0x144   : > { %v1525_v50 = vpack.c.bf16 %v1719_v48, %v1718_v44  ;;  %v1545_v51 = vpack.c.bf16 %v1727_v49, %v1726_v45 }
 0x145   : > { %v462_v52 = vpop.f32.mrf.mxu0  ;;  %v494_v53 = vpop.f32.mrf.mxu1 }
 0x146   : > { %1629 = vst [vmem:[#allocation2 + $0x18] sm:$0xff] %v1525_v50   ;;  %1633 = vst [vmem:[#allocation2 + $0x38] sm:$0xff] %v1545_v51   ;;  %v1520_v54 = vpack.c.bf16 %v462_v52, %v459_v46  ;;  %v1540_v55 = vpack.c.bf16 %v494_v53, %v491_v47 }
 0x148   : > { %1628 = vst [vmem:[#allocation2 + $0x10] sm:$0xff] %v1520_v54   ;;  %1632 = vst [vmem:[#allocation2 + $0x30] sm:$0xff] %v1540_v55  }
 0x149 PF: > { %p1386_p12 = scmp.le.s32.totalorder %s2117_s18, 0 }
 0x14b   : > { %589 = sbr.rel (%p1386_p12) target bundleno = 580 (0x244), region = 60 }
 0x150   : > { %v1402_v56 = vcombine.low %v2319_v14, %v2321_v15  ;;  %v1401_v57 = vcombine.low %v2315_v12, %v2317_v13  ;;  %v1935_v58 = vld [vmem:[#allocation3] sm:$0xff]   ;;  %v1400_v60 = vcombine.low %v2311_v10, %v2313_v11  ;;  %v1399_v61 = vcombine.low %v2307_v8, %v2309_v9  ;;  %v1940_v9 = vld [vmem:[#allocation3 + $0x30] sm:$0xff]  }
 0x151   : > { %v1936_v59 = vld [vmem:[#allocation3 + $0x20] sm:$0xff]   ;;  %1744 = vmatprep.mubr.bf16.mxu0 %v1935_v58  ;;  %v1398_v62 = vcombine.low %v2303_v6, %v2305_v7  ;;  %v1397_v63 = vcombine.low %v2299_v4, %v2301_v5  ;;  %v1396_v8 = vcombine.low %v2295_v2, %v2297_v3  ;;  %v1395_v6 = vcombine.low %v2291_v0, %v2293_v1  ;;  %v1937_v7 = vld [vmem:[#allocation3 + $0x8] sm:$0xff]   ;;  %v1939_v5 = vld [vmem:[#allocation3 + $0x10] sm:$0xff]  }
 0x152   : > { %1728 = vmatprep.subr.bf16.mxu0 %v1402_v56  ;;  %1808 = vmatprep.subr.bf16.mxu1 %v1402_v56  ;;  %v1938_v4 = vld [vmem:[#allocation3 + $0x28] sm:$0xff]   ;;  %v1941_v2 = vld [vmem:[#allocation3 + $0x18] sm:$0xff]  }
 0x153   : > { %1729 = vmatpush3.bf16.msra.mxu0 %v1402_v56  ;;  %1816 = vmatpush3.bf16.msra.mxu1 %v1402_v56  ;;  %v1942_v3 = vld [vmem:[#allocation3 + $0x38] sm:$0xff]  }
 0x154   : > { %1730 = vmatprep.subr.bf16.mxu0 %v1401_v57  ;;  %1809 = vmatprep.subr.bf16.mxu1 %v1401_v57 }
 0x155   : > { %1752 = vmatprep.mubr.bf16.mxu1 %v1936_v59 }
 0x157   : > { %1731 = vmatpush3.bf16.msra.mxu0 %v1401_v57  ;;  %1817 = vmatpush3.bf16.msra.mxu1 %v1401_v57 }
 0x158   : > { %1732 = vmatprep.subr.bf16.mxu0 %v1400_v60  ;;  %1810 = vmatprep.subr.bf16.mxu1 %v1400_v60 }
 0x15b   : > { %1733 = vmatpush3.bf16.msra.mxu0 %v1400_v60  ;;  %1818 = vmatpush3.bf16.msra.mxu1 %v1400_v60 }
 0x15c   : > { %1734 = vmatprep.subr.bf16.mxu0 %v1399_v61  ;;  %1811 = vmatprep.subr.bf16.mxu1 %v1399_v61 }
 0x15f   : > { %1735 = vmatpush3.bf16.msra.mxu0 %v1399_v61  ;;  %1819 = vmatpush3.bf16.msra.mxu1 %v1399_v61 }
 0x160   : > { %1736 = vmatprep.subr.bf16.mxu0 %v1398_v62  ;;  %1812 = vmatprep.subr.bf16.mxu1 %v1398_v62 }
 0x163   : > { %1737 = vmatpush3.bf16.msra.mxu0 %v1398_v62  ;;  %1820 = vmatpush3.bf16.msra.mxu1 %v1398_v62 }
 0x164   : > { %1738 = vmatprep.subr.bf16.mxu0 %v1397_v63  ;;  %1813 = vmatprep.subr.bf16.mxu1 %v1397_v63 }
 0x167   : > { %1739 = vmatpush3.bf16.msra.mxu0 %v1397_v63  ;;  %1821 = vmatpush3.bf16.msra.mxu1 %v1397_v63 }
 0x168   : > { %1740 = vmatprep.subr.bf16.mxu0 %v1396_v8  ;;  %1814 = vmatprep.subr.bf16.mxu1 %v1396_v8 }
 0x16b   : > { %1741 = vmatpush3.bf16.msra.mxu0 %v1396_v8  ;;  %1822 = vmatpush3.bf16.msra.mxu1 %v1396_v8 }
 0x16c   : > { %1742 = vmatprep.subr.bf16.mxu0 %v1395_v6  ;;  %1815 = vmatprep.subr.bf16.mxu1 %v1395_v6 }
 0x16f   : > { %1743 = vmatpush3.bf16.msra.mxu0 %v1395_v6  ;;  %1823 = vmatpush3.bf16.msra.mxu1 %v1395_v6 }
 0x172   : > { %1745 = vmatmul.mubr.bf16.vlgmr.msra.gmra.mxu0 %v1937_v7  ;;  %1753 = vmatmul.mubr.bf16.vlgmr.msra.gmra.mxu1 %v1938_v4 }
 0x173   : > { %1748 = vmatprep.mubr.bf16.mxu0 %v1939_v5  ;;  %1756 = vmatprep.mubr.bf16.mxu1 %v1940_v9 }
 0x17a   : > { %1749 = vmatmul.mubr.bf16.gmra.mxu0 %v1941_v2  ;;  %1757 = vmatmul.mubr.bf16.gmra.mxu1 %v1942_v3 }
 0x232   : > { %v1746_v10 = vpop.f32.mrf.mxu0  ;;  %v1754_v0 = vpop.f32.mrf.mxu1 }
 0x234   : > { %v736_v1 = vpop.f32.mrf.mxu0  ;;  %v768_v11 = vpop.f32.mrf.mxu1 }
 0x236   : > { %v1747_v12 = vpop.f32.mrf.mxu0  ;;  %v1755_v13 = vpop.f32.mrf.mxu1 }
 0x237   : > { %v1555_v14 = vpack.c.bf16 %v1747_v12, %v1746_v10  ;;  %v1575_v15 = vpack.c.bf16 %v1755_v13, %v1754_v0 }
 0x238   : > { %v739_v16 = vpop.f32.mrf.mxu0  ;;  %v771_v17 = vpop.f32.mrf.mxu1 }
 0x239   : > { %1634 = vst [vmem:[#allocation2 + $0x8] sm:$0xff] %v1555_v14   ;;  %1638 = vst [vmem:[#allocation2 + $0x28] sm:$0xff] %v1575_v15   ;;  %v1550_v18 = vpack.c.bf16 %v739_v16, %v736_v1  ;;  %v1570_v19 = vpack.c.bf16 %v771_v17, %v768_v11 }
 0x23a   : > { %v1750_v20 = vpop.f32.mrf.mxu0  ;;  %v1758_v21 = vpop.f32.mrf.mxu1 }
 0x23b   : > { %1551 = vst [vmem:[#allocation2] sm:$0xff] %v1550_v18   ;;  %1637 = vst [vmem:[#allocation2 + $0x20] sm:$0xff] %v1570_v19  }
 0x23c   : > { %v752_v22 = vpop.f32.mrf.mxu0  ;;  %v784_v23 = vpop.f32.mrf.mxu1 }
 0x23e   : > { %v1751_v24 = vpop.f32.mrf.mxu0  ;;  %v1759_v25 = vpop.f32.mrf.mxu1 }
 0x23f   : > { %v1565_v26 = vpack.c.bf16 %v1751_v24, %v1750_v20  ;;  %v1585_v27 = vpack.c.bf16 %v1759_v25, %v1758_v21 }
 0x240   : > { %v755_v28 = vpop.f32.mrf.mxu0  ;;  %v787_v29 = vpop.f32.mrf.mxu1 }
 0x241   : > { %1636 = vst [vmem:[#allocation2 + $0x18] sm:$0xff] %v1565_v26   ;;  %1640 = vst [vmem:[#allocation2 + $0x38] sm:$0xff] %v1585_v27   ;;  %v1560_v30 = vpack.c.bf16 %v755_v28, %v752_v22  ;;  %v1580_v31 = vpack.c.bf16 %v787_v29, %v784_v23 }
 0x243   : > { %1635 = vst [vmem:[#allocation2 + $0x10] sm:$0xff] %v1560_v30   ;;  %1639 = vst [vmem:[#allocation2 + $0x30] sm:$0xff] %v1580_v31  }
 0x244 PF: > { %v1945_v34 = vld [vmem:[#allocation2 + $0x28] sm:$0xff]   ;;  %v1946_v35 = vld [vmem:[#allocation2 + $0x20] sm:$0xff]   ;;  %v1955_v44 = vld [vmem:[#allocation4 + $0x10] sm:$0xff]   ;;  %p1436_p9 = scmp.ge.s32.totalorder %s2117_s18, 2 }
 0x245   : > { %v1951_v36 = vld [vmem:[#allocation4] sm:$0xff]   ;;  %v1949_v40 = vld [vmem:[#allocation2 + $0x8] sm:$0xff]   ;;  %v1956_v45 = vld [vmem:[#allocation4 + $0x30] sm:$0xff]  }
 0x246   : > { %v1952_v37 = vld [vmem:[#allocation4 + $0x20] sm:$0xff]   ;;  %1776 = vmatprep.mubr.bf16.mxu0 %v1951_v36  ;;  %v1953_v42 = vld [vmem:[#allocation4 + $0x8] sm:$0xff]   ;;  %v1957_v46 = vld [vmem:[#allocation4 + $0x18] sm:$0xff]  }
 0x247   : > { %1784 = vmatprep.mubr.bf16.mxu1 %v1952_v37  ;;  %v1950_v41 = vld [vmem:[#allocation2] sm:$0xff]   ;;  %v1954_v43 = vld [vmem:[#allocation4 + $0x28] sm:$0xff]   ;;  %v1958_v47 = vld [vmem:[#allocation4 + $0x38] sm:$0xff]  }
 0x248   : > { %v1943_v32 = vld [vmem:[#allocation2 + $0x38] sm:$0xff]   ;;  %v1419_v48 = vld [vmem:[%s270_s5] ss:$0 sm:$0xff] }
 0x249   : > { %1760 = vmatprep.subr.bf16.mxu0 %v1943_v32  ;;  %1824 = vmatprep.subr.bf16.mxu1 %v1943_v32  ;;  %v1947_v38 = vld [vmem:[#allocation2 + $0x18] sm:$0xff]  }
 0x24a   : > { %v1944_v33 = vld [vmem:[#allocation2 + $0x30] sm:$0xff]   ;;  %1761 = vmatpush3.bf16.msra.mxu0 %v1943_v32  ;;  %1832 = vmatpush3.bf16.msra.mxu1 %v1943_v32 }
 0x24b   : > { %1762 = vmatprep.subr.bf16.mxu0 %v1944_v33  ;;  %1825 = vmatprep.subr.bf16.mxu1 %v1944_v33  ;;  %v1948_v39 = vld [vmem:[#allocation2 + $0x10] sm:$0xff]  }
 0x24e   : > { %1763 = vmatpush3.bf16.msra.mxu0 %v1944_v33  ;;  %1833 = vmatpush3.bf16.msra.mxu1 %v1944_v33 }
 0x24f   : > { %1764 = vmatprep.subr.bf16.mxu0 %v1945_v34  ;;  %1826 = vmatprep.subr.bf16.mxu1 %v1945_v34 }
 0x252   : > { %1765 = vmatpush3.bf16.msra.mxu0 %v1945_v34  ;;  %1834 = vmatpush3.bf16.msra.mxu1 %v1945_v34 }
 0x253   : > { %1766 = vmatprep.subr.bf16.mxu0 %v1946_v35  ;;  %1827 = vmatprep.subr.bf16.mxu1 %v1946_v35 }
 0x256   : > { %1767 = vmatpush3.bf16.msra.mxu0 %v1946_v35  ;;  %1835 = vmatpush3.bf16.msra.mxu1 %v1946_v35 }
 0x257   : > { %1768 = vmatprep.subr.bf16.mxu0 %v1947_v38  ;;  %1828 = vmatprep.subr.bf16.mxu1 %v1947_v38 }
 0x25a   : > { %1769 = vmatpush3.bf16.msra.mxu0 %v1947_v38  ;;  %1836 = vmatpush3.bf16.msra.mxu1 %v1947_v38 }
 0x25b   : > { %1770 = vmatprep.subr.bf16.mxu0 %v1948_v39  ;;  %1829 = vmatprep.subr.bf16.mxu1 %v1948_v39 }
 0x25e   : > { %1771 = vmatpush3.bf16.msra.mxu0 %v1948_v39  ;;  %1837 = vmatpush3.bf16.msra.mxu1 %v1948_v39 }
 0x25f   : > { %1772 = vmatprep.subr.bf16.mxu0 %v1949_v40  ;;  %1830 = vmatprep.subr.bf16.mxu1 %v1949_v40 }
 0x262   : > { %1773 = vmatpush3.bf16.msra.mxu0 %v1949_v40  ;;  %1838 = vmatpush3.bf16.msra.mxu1 %v1949_v40 }
 0x263   : > { %1774 = vmatprep.subr.bf16.mxu0 %v1950_v41  ;;  %1831 = vmatprep.subr.bf16.mxu1 %v1950_v41 }
 0x266   : > { %1775 = vmatpush3.bf16.msra.mxu0 %v1950_v41  ;;  %1839 = vmatpush3.bf16.msra.mxu1 %v1950_v41 }
 0x269   : > { %1777 = vmatmul.mubr.bf16.vlgmr.msra.gmra.mxu0 %v1953_v42  ;;  %1785 = vmatmul.mubr.bf16.vlgmr.msra.gmra.mxu1 %v1954_v43 }
 0x26a   : > { %1780 = vmatprep.mubr.bf16.mxu0 %v1955_v44  ;;  %1788 = vmatprep.mubr.bf16.mxu1 %v1956_v45 }
 0x271   : > { %1781 = vmatmul.mubr.bf16.gmra.mxu0 %v1957_v46  ;;  %1789 = vmatmul.mubr.bf16.gmra.mxu1 %v1958_v47 }
 0x329   : > { %v1778_v49 = vpop.f32.mrf.mxu0  ;;  %v1786_v50 = vpop.f32.mrf.mxu1 }
 0x32a   : > { %v2362_v51 = vadd.f32 %v1778_v49, %v1419_v48  ;;  %v2364_v52 = vadd.f32 %v1786_v50, %v1419_v48 }
 0x32b   : > { %v1048_v53 = vpop.f32.mrf.mxu0  ;;  %v1080_v54 = vpop.f32.mrf.mxu1 }
 0x32c   : > { %v1049_v55 = vadd.f32 %v1419_v48, %v1048_v53  ;;  %v2366_v56 = vadd.f32 %v1419_v48, %v1080_v54 }
 0x32d   : > { %v1779_v57 = vpop.f32.mrf.mxu0  ;;  %v1787_v58 = vpop.f32.mrf.mxu1 }
 0x32e   : > { %v1060_v59 = vadd.f32 %v1779_v57, %v1419_v48  ;;  %v2368_v60 = vadd.f32 %v1787_v58, %v1419_v48 }
 0x32f   : > { %v1051_v61 = vpop.f32.mrf.mxu0  ;;  %v1083_v62 = vpop.f32.mrf.mxu1 }
 0x330   : > { %v1052_v63 = vadd.f32 %v1419_v48, %v1051_v61  ;;  %v1084_v8 = vadd.f32 %v1419_v48, %v1083_v62 }
 0x331   : > { %v1782_v6 = vpop.f32.mrf.mxu0  ;;  %v1790_v7 = vpop.f32.mrf.mxu1 }
 0x332   : > { %v1073_v4 = vadd.f32 %v1782_v6, %v1419_v48  ;;  %v2370_v5 = vadd.f32 %v1790_v7, %v1419_v48 }
 0x333   : > { %v1064_v9 = vpop.f32.mrf.mxu0  ;;  %v1096_v2 = vpop.f32.mrf.mxu1 }
 0x334   : > { %v1065_v3 = vadd.f32 %v1419_v48, %v1064_v9  ;;  %v1097_v10 = vadd.f32 %v1419_v48, %v1096_v2  ;;  %1114 = sbr.rel (%p1436_p9) target bundleno = 835 (0x343), region = 64 }
 0x335   : > { %v1783_v0 = vpop.f32.mrf.mxu0  ;;  %v1791_v1 = vpop.f32.mrf.mxu1 }
 0x336   : > { %v1076_v11 = vadd.f32 %v1783_v0, %v1419_v48  ;;  %v1108_v12 = vadd.f32 %v1791_v1, %v1419_v48 }
 0x337   : > { %v1067_v13 = vpop.f32.mrf.mxu0  ;;  %v1099_v14 = vpop.f32.mrf.mxu1 }
 0x338   : > { %v1068_v15 = vadd.f32 %v1419_v48, %v1067_v13  ;;  %v1100_v16 = vadd.f32 %v1419_v48, %v1099_v14 }
 0x339   : > { %v1116_v17 = vmax.f32 %v1049_v55, 0.0  ;;  %v1117_v18 = vmax.f32 %v1052_v63, 0.0  ;;  %v1118_v19 = vmax.f32 %v2362_v51, 0.0  ;;  %v1119_v20 = vmax.f32 %v1060_v59, 0.0 }
 0x33a   : > { %v1120_v21 = vmax.f32 %v1065_v3, 0.0  ;;  %v1121_v22 = vmax.f32 %v1068_v15, 0.0  ;;  %v1122_v23 = vmax.f32 %v1073_v4, 0.0  ;;  %v1123_v24 = vmax.f32 %v1076_v11, 0.0 }
 0x33b   : > { %v1590_v25 = vpack.c.bf16 %v1117_v18, %v1116_v17  ;;  %v1595_v26 = vpack.c.bf16 %v1119_v20, %v1118_v19  ;;  %v1124_v27 = vmax.f32 %v2366_v56, 0.0  ;;  %v1125_v28 = vmax.f32 %v1084_v8, 0.0 }
 0x33c   : > { %v1600_v29 = vpack.c.bf16 %v1121_v22, %v1120_v21  ;;  %v1605_v30 = vpack.c.bf16 %v1123_v24, %v1122_v23  ;;  %v1126_v31 = vmax.f32 %v2364_v52, 0.0  ;;  %v1127_v32 = vmax.f32 %v2368_v60, 0.0 }
 0x33d   : > { %1591 = vst [vmem:[#allocation3] sm:$0xff] %v1590_v25   ;;  %1641 = vst [vmem:[#allocation3 + $0x8] sm:$0xff] %v1595_v26   ;;  %v1610_v33 = vpack.c.bf16 %v1125_v28, %v1124_v27  ;;  %v1128_v34 = vmax.f32 %v1097_v10, 0.0  ;;  %v1129_v35 = vmax.f32 %v1100_v16, 0.0  ;;  %v1130_v36 = vmax.f32 %v2370_v5, 0.0 }
 0x33e   : > { %1642 = vst [vmem:[#allocation3 + $0x10] sm:$0xff] %v1600_v29   ;;  %1643 = vst [vmem:[#allocation3 + $0x18] sm:$0xff] %v1605_v30   ;;  %v1615_v37 = vpack.c.bf16 %v1127_v32, %v1126_v31  ;;  %v1131_v38 = vmax.f32 %v1108_v12, 0.0 }
 0x33f   : > { %1644 = vst [vmem:[#allocation3 + $0x20] sm:$0xff] %v1610_v33   ;;  %v1620_v39 = vpack.c.bf16 %v1129_v35, %v1128_v34 }
 0x340   : > { %1645 = vst [vmem:[#allocation3 + $0x28] sm:$0xff] %v1615_v37   ;;  %v1625_v40 = vpack.c.bf16 %v1131_v38, %v1130_v36 }
 0x341   : > { %1646 = vst [vmem:[#allocation3 + $0x30] sm:$0xff] %v1620_v39  }
 0x342   : > { %1647 = vst [vmem:[#allocation3 + $0x38] sm:$0xff] %v1625_v40  }
 0x343 PF: > { %p1453_p5 = scmp.ne.s32.totalorder %s2117_s18, 2 }
 0x345   : > { %1219 = sbr.rel (%p1453_p5) target bundleno = 850 (0x352), region = 68 }
 0x34a   : > { %1220 = vst [vmem:[#allocation10] sm:$0xff] %v1049_v55  ;;  %1221 = vst [vmem:[#allocation10 + $0x8] sm:$0xff] %v1052_v63 }
 0x34b   : > { %1222 = vst [vmem:[#allocation10 + $0x10] sm:$0xff] %v2362_v51  ;;  %1223 = vst [vmem:[#allocation10 + $0x18] sm:$0xff] %v1060_v59 }
 0x34c   : > { %1224 = vst [vmem:[#allocation10 + $0x20] sm:$0xff] %v1065_v3  ;;  %1225 = vst [vmem:[#allocation10 + $0x28] sm:$0xff] %v1068_v15 }
 0x34d   : > { %1226 = vst [vmem:[#allocation10 + $0x30] sm:$0xff] %v1073_v4  ;;  %1227 = vst [vmem:[#allocation10 + $0x38] sm:$0xff] %v1076_v11 }
 0x34e   : > { %1228 = vst [vmem:[#allocation10 + $0x40] sm:$0xff] %v2366_v56  ;;  %1229 = vst [vmem:[#allocation10 + $0x48] sm:$0xff] %v1084_v8 }
 0x34f   : > { %1230 = vst [vmem:[#allocation10 + $0x50] sm:$0xff] %v2364_v52  ;;  %1231 = vst [vmem:[#allocation10 + $0x58] sm:$0xff] %v2368_v60 }
 0x350   : > { %1232 = vst [vmem:[#allocation10 + $0x60] sm:$0xff] %v1097_v10  ;;  %1233 = vst [vmem:[#allocation10 + $0x68] sm:$0xff] %v1100_v16 }
 0x351   : > { %1234 = vst [vmem:[#allocation10 + $0x70] sm:$0xff] %v2370_v5  ;;  %1235 = vst [vmem:[#allocation10 + $0x78] sm:$0xff] %v1108_v12 }
 0x352 PF: > { %p1870_p3 = scmp.eq.s32.totalorder %s2189_s21, 2  ;;  %s2132_s18 = smov [#allocation10]  }
 0x353   : > { %s1245_s7 = sshll.u32 %s2132_s18, 4  ;;  %s1246_s7 = int_to_ptr.vmem [resolvable:$true] %s1245_s7 }
 0x354   : > { %s2039_s9 = scalar_lea.vmem %s1246_s7, 2048  ;;  %p2046_p2 = scmp.lt.s32.totalorder %s1246_s7, %s1246_s7 }
 0x355   : > { %p2040_p11 = scmp.ne.s32.totalorder %s1246_s7, %s2039_s9  ;;  %p2047_p4 = scmp.lt.s32.totalorder %s2039_s9, %s2039_s9 }
 0x357   : > { %p2041_p0 = pnand %p2040_p11, %p1870_p3  ;;  %p2048_p13 = por %p2047_p4, %p2046_p2 }
 0x359   : > { %p2042_p1 = pneg %p2041_p0 }
 0x35b   : > { %p2049_p6 = pnand %p2048_p13, %p2042_p1 }
 0x35d   : > { %2052 = shalt.err (!%p2049_p6)
}
 0x35e   : > { %s2133_s10 = smov 128   ;;  %s2134_s11 = smov 8  }
 0x35f   : > { %1851 = dma.vmem_to_hbm [thread:$0]  (%p1870_p3), %s1246_s7, 2048, %s2418_s4, [#allocation6], %s2133_s10, %s2133_s10, %s2134_s11  }
 0x360   : > { %2100 = dma.done.wait (%p1870_p3), [#allocation6], 2048  }
 0x361   : > { %2102 = vsyncadd (%p1870_p3), [#allocation6], 4294965248 }
 0x362 PF: > { %s17_s20 = sadd.s32 1, %s2125_s20   ;;  %s2430_s15 = smov %s2109_s16 }
 0x363   : > { %p14_p10 = scmp.ge.s32.totalorder %s17_s20, 5   ;;  %s2431_s16 = smov %s2113_s17 }
 0x364   : > { %s2432_s17 = smov %s2258_s8  ;;  %s2433_s18 = smov %s2121_s19 }
 0x365   : > { %s2434_s19 = smov %s2436_s12  ;;  %16 = sbr.rel (!%p14_p10) target bundleno = 5 (0x5), region = 106 }
 0x36a   :  { %1261 = vsyncpa [#allocation5], 1 }
 0x36b   :  { %1263 = vsyncpa [#allocation5 + $0x1], 1 }
 0x36c   :  { %1264 = vsyncpa [#allocation8], 1 }
 0x36d   :  { %1265 = vsyncpa [#allocation6], 1 }
 0x36e   :  { %1267 = vsyncpa [#allocation6 + $0x1], 1 }

</bundles_post_ra>
